<compile_context>
chip_gen: v6e
topology: v6e:2x2x1
jax: 0.10.0
libtpu: 0.0.40
codegen_flags: <defaults>
</compile_context>

<pallas_src>
import functools
import math

import jax
import jax.numpy as jnp
from jax import lax
from jax.experimental import pallas as pl
from jax.experimental.pallas import tpu as pltpu


def _layernorm(y, gamma, beta, eps=1e-5):
    # PyTorch LayerNorm: biased variance, eps inside the sqrt.
    mean = jnp.mean(y, axis=-1, keepdims=True)
    var = jnp.mean(jnp.square(y - mean), axis=-1, keepdims=True)
    return (y - mean) * lax.rsqrt(var + eps) * gamma + beta


def _decoder_kernel(x_ref, mask_ref, wqkv_ref, wo_ref, g1_ref, b1_ref,
                    w1_ref, w2_ref, g2_ref, b2_ref, o_ref, ctx_ref,
                    *, num_heads: int, d_head: int):
    # x_ref   : (M, D) f32, M = B*S (batch folded into matmul M dim)
    # mask_ref: (M, M) i32, 1 where attention is forbidden (block-diag causal)
    # wqkv_ref: (D, 3*H*Dh) bf16 fused QKV weight; wo_ref: (H*Dh, D) bf16
    # w1_ref  : (D, d_ffn) bf16; w2_ref: (d_ffn, D) bf16
    # g*/b*   : (1, D) f32 LayerNorm params
    # ctx_ref : (M, H*Dh) f32 VMEM scratch for per-head attention contexts
    x = x_ref[...]                                    # (M, D) f32
    xb = x.astype(jnp.bfloat16)
    hd = num_heads * d_head
    scale = 1.0 / math.sqrt(d_head)

    # ---- fused QKV projection: one MXU pass for all batches / heads --------
    qkv = jnp.dot(xb, wqkv_ref[...],
                  preferred_element_type=jnp.float32)  # (M, 3*H*Dh) f32

    masked = mask_ref[...] != 0                        # (M, M) bool

    # ---- per-head causal attention (static unroll over tiny H) -------------
    for h in range(num_heads):
        q_lo, q_hi = h * d_head, (h + 1) * d_head
        qh = qkv[:, q_lo:q_hi].astype(jnp.bfloat16)              # (M, Dh)
        kh = qkv[:, hd + q_lo:hd + q_hi].astype(jnp.bfloat16)    # (M, Dh)
        vh = qkv[:, 2 * hd + q_lo:2 * hd + q_hi].astype(jnp.bfloat16)

        # scores = (qh @ kh^T) / sqrt(d_k); masked_fill(-1e7) like torch.
        s = lax.dot_general(qh, kh, (((1,), (1,)), ((), ())),
                            preferred_element_type=jnp.float32) * scale
        s = jnp.where(masked, jnp.float32(-1e7), s)
        s = s - jnp.max(s, axis=-1, keepdims=True)
        p = jnp.exp(s)
        p = p * pl.reciprocal(jnp.sum(p, axis=-1, keepdims=True), approx=True)

        # Write this head's context into its lane range of the VMEM scratch
        # (avoids jnp.concatenate relayout before the output projection).
        ctx_ref[:, q_lo:q_hi] = jnp.dot(p.astype(jnp.bfloat16), vh,
                                        preferred_element_type=jnp.float32)

    # ---- output projection + residual + LayerNorm ---------------------------
    attn = jnp.dot(ctx_ref[...].astype(jnp.bfloat16), wo_ref[...],
                   preferred_element_type=jnp.float32)           # (M, D)
    y1 = _layernorm(attn + x, g1_ref[...], b1_ref[...])          # f32

    # ---- FeedForwardNet: Linear -> ReLU -> Linear + residual + LayerNorm ----
    h1 = jnp.dot(y1.astype(jnp.bfloat16), w1_ref[...],
                 preferred_element_type=jnp.float32)             # (M, d_ffn)
    h1 = jnp.maximum(h1, 0.0)
    f = jnp.dot(h1.astype(jnp.bfloat16), w2_ref[...],
                preferred_element_type=jnp.float32)              # (M, D)
    o_ref[...] = _layernorm(f + y1, g2_ref[...], b2_ref[...])


def decoder_layer_forward(x, params, *, num_heads: int, d_head: int = 64):
    """x: [B, S, D] f32; params dict of f32 weights (matmul layout)."""
    b, s, d = x.shape
    bs = b * s
    hd = num_heads * d_head
    d_ffn = params["w1"].shape[1]

    x2 = x.reshape(bs, d)

    # Fuse QKV weights and cast all matmul weights to bf16 (f32 accumulation
    # in-kernel).  Under jit this packing is hoisted / done once.
    wqkv = jnp.concatenate(
        [params["wq"], params["wk"], params["wv"]], axis=1).astype(jnp.bfloat16)
    wo = params["wo"].astype(jnp.bfloat16)
    w1 = params["w1"].astype(jnp.bfloat16)
    w2 = params["w2"].astype(jnp.bfloat16)

    # Block-diagonal causal mask over the flattened (batch*seq) axis:
    # forbid cross-batch attention and future positions within a batch.
    idx = jnp.arange(bs, dtype=jnp.int32)
    same_batch = (idx[:, None] // s) == (idx[None, :] // s)
    causal_ok = idx[None, :] <= idx[:, None]
    mask_i32 = jnp.logical_not(jnp.logical_and(same_batch, causal_ok)
                               ).astype(jnp.int32)               # (bs, bs)

    rep = lambda i: (0, 0)    # single grid step; full-array blocks
    out2 = pl.pallas_call(
        functools.partial(_decoder_kernel, num_heads=num_heads, d_head=d_head),
        out_shape=jax.ShapeDtypeStruct((bs, d), jnp.float32),
        grid=(1,),
        in_specs=[
            pl.BlockSpec((bs, d), rep),        # x (flattened batch*seq)
            pl.BlockSpec((bs, bs), rep),       # block-diag causal mask
            pl.BlockSpec((d, 3 * hd), rep),    # fused QKV weight (bf16)
            pl.BlockSpec((hd, d), rep),        # w_O (bf16)
            pl.BlockSpec((1, d), rep),         # ln1 gamma
            pl.BlockSpec((1, d), rep),         # ln1 beta
            pl.BlockSpec((d, d_ffn), rep),     # ff W1 (bf16)
            pl.BlockSpec((d_ffn, d), rep),     # ff W2 (bf16)
            pl.BlockSpec((1, d), rep),         # ln2 gamma
            pl.BlockSpec((1, d), rep),         # ln2 beta
        ],
        out_specs=pl.BlockSpec((bs, d), rep),
        scratch_shapes=[pltpu.VMEM((bs, hd), jnp.float32)],   # per-head ctx
        compiler_params=pltpu.CompilerParams(
            dimension_semantics=("arbitrary",)),
    )(x2, mask_i32, wqkv, wo, params["ln1_g"], params["ln1_b"],
      w1, w2, params["ln2_g"], params["ln2_b"])

    return out2.reshape(b, s, d)


def decoder_layer_ref(x, params, *, num_heads: int, d_head: int = 64):
    """Pure-JAX f32 reference mirroring the PyTorch module (high precision)."""
    b, s, d = x.shape
    hp = dict(precision=jax.lax.Precision.HIGHEST)

    def ln(y, g, bta, eps=1e-5):
        m = jnp.mean(y, axis=-1, keepdims=True)
        v = jnp.mean((y - m) ** 2, axis=-1, keepdims=True)
        return (y - m) / jnp.sqrt(v + eps) * g.reshape(-1) + bta.reshape(-1)

    def heads(t):
        return t.reshape(b, s, num_heads, d_head).transpose(0, 2, 1, 3)

    q = heads(jnp.einsum("bsd,de->bse", x, params["wq"], **hp))
    k = heads(jnp.einsum("bsd,de->bse", x, params["wk"], **hp))
    v = heads(jnp.einsum("bsd,de->bse", x, params["wv"], **hp))
    scores = jnp.einsum("bhqd,bhkd->bhqk", q, k, **hp) / math.sqrt(d_head)
    mask = jnp.triu(jnp.ones((s, s), dtype=bool), k=1)
    scores = jnp.where(mask, jnp.float32(-1e7), scores)
    p = jax.nn.softmax(scores, axis=-1)
    ctx = jnp.einsum("bhqk,bhkd->bhqd", p, v, **hp)
    ctx = ctx.transpose(0, 2, 1, 3).reshape(b, s, num_heads * d_head)
    attn = jnp.einsum("bse,ed->bsd", ctx, params["wo"], **hp)
    y1 = ln(attn + x, params["ln1_g"], params["ln1_b"])
    h = jax.nn.relu(jnp.einsum("bsd,df->bsf", y1, params["w1"], **hp))
    f = jnp.einsum("bsf,fd->bsd", h, params["w2"], **hp)
    return ln(f + y1, params["ln2_g"], params["ln2_b"])


if __name__ == "__main__":
    # Small shapes consistent with the module (d_head=64 and d_ffn=2048 are
    # hard-coded in the PyTorch spec).
    batch, seq, d_model = 2, 8, 128
    num_heads, d_head, d_ffn = 2, 64, 2048

    key = jax.random.PRNGKey(0)
    ks = jax.random.split(key, 8)

    def init(k, shape):
        # Linear(bias=False)-like init, scaled by 1/sqrt(fan_in).
        return (jax.random.uniform(k, shape, jnp.float32, -1.0, 1.0)
                / math.sqrt(shape[0]))

    params = {
        "wq": init(ks[0], (d_model, num_heads * d_head)),
        "wk": init(ks[1], (d_model, num_heads * d_head)),
        "wv": init(ks[2], (d_model, num_heads * d_head)),
        "wo": init(ks[3], (num_heads * d_head, d_model)),
        "ln1_g": jnp.ones((1, d_model), jnp.float32),
        "ln1_b": jnp.zeros((1, d_model), jnp.float32),
        "w1": init(ks[4], (d_model, d_ffn)),
        "w2": init(ks[5], (d_ffn, d_model)),
        "ln2_g": jnp.ones((1, d_model), jnp.float32),
        "ln2_b": jnp.zeros((1, d_model), jnp.float32),
    }
    x = jax.random.normal(ks[6], (batch, seq, d_model), jnp.float32)

    out = decoder_layer_forward(x, params, num_heads=num_heads, d_head=d_head)
    out = jax.block_until_ready(out)

    assert out.shape == (batch, seq, d_model)
    assert out.dtype == jnp.float32
    assert bool(jnp.all(jnp.isfinite(out)))

    ref = decoder_layer_ref(x, params, num_heads=num_heads, d_head=d_head)
    # bf16 MXU operands (f32 accumulation) vs. an f32-HIGHEST reference:
    # allow a slightly looser absolute tolerance than the pure-f32 kernel.
    err = float(jnp.max(jnp.abs(out - ref)))
    assert err < 5e-2, f"mismatch vs JAX reference: max abs err {err}"

    print("KERNEL_OK")
</pallas_src>

<mosaic_0001>
module attributes {stable_mosaic.version = 11 : i64} {
  func.func @_decoder_kernel(%arg0: i32, %arg1: memref<16x128xf32, #tpu.memory_space<vmem>>, %arg2: memref<16x16xi32, #tpu.memory_space<vmem>>, %arg3: memref<128x384xbf16, #tpu.memory_space<vmem>>, %arg4: memref<128x128xbf16, #tpu.memory_space<vmem>>, %arg5: memref<1x128xf32, #tpu.memory_space<vmem>>, %arg6: memref<1x128xf32, #tpu.memory_space<vmem>>, %arg7: memref<128x2048xbf16, #tpu.memory_space<vmem>>, %arg8: memref<2048x128xbf16, #tpu.memory_space<vmem>>, %arg9: memref<1x128xf32, #tpu.memory_space<vmem>>, %arg10: memref<1x128xf32, #tpu.memory_space<vmem>>, %arg11: memref<16x128xf32, #tpu.memory_space<vmem>>, %arg12: memref<16x128xf32, #tpu.memory_space<vmem>>) attributes {dimension_semantics = [#tpu.dimension_semantics<arbitrary>], iteration_bounds = array<i64: 1>, scalar_prefetch = 0 : i64, scratch_operands = 1 : i64, tpu.core_type = #tpu.core_type<tc>, window_params = [{pipeline_mode = #tpu.pipeline_mode<synchronous>, transform_indices = @transform_0, window_bounds = array<i64: 16, 128>}, {pipeline_mode = #tpu.pipeline_mode<synchronous>, transform_indices = @transform_1, window_bounds = array<i64: 16, 16>}, {pipeline_mode = #tpu.pipeline_mode<synchronous>, transform_indices = @transform_2, window_bounds = array<i64: 128, 384>}, {pipeline_mode = #tpu.pipeline_mode<synchronous>, transform_indices = @transform_3, window_bounds = array<i64: 128, 128>}, {pipeline_mode = #tpu.pipeline_mode<synchronous>, transform_indices = @transform_4, window_bounds = array<i64: 1, 128>}, {pipeline_mode = #tpu.pipeline_mode<synchronous>, transform_indices = @transform_5, window_bounds = array<i64: 1, 128>}, {pipeline_mode = #tpu.pipeline_mode<synchronous>, transform_indices = @transform_6, window_bounds = array<i64: 128, 2048>}, {pipeline_mode = #tpu.pipeline_mode<synchronous>, transform_indices = @transform_7, window_bounds = array<i64: 2048, 128>}, {pipeline_mode = #tpu.pipeline_mode<synchronous>, transform_indices = @transform_8, window_bounds = array<i64: 1, 128>}, {pipeline_mode = #tpu.pipeline_mode<synchronous>, transform_indices = @transform_9, window_bounds = array<i64: 1, 128>}, {pipeline_mode = #tpu.pipeline_mode<synchronous>, transform_indices = @transform_10, window_bounds = array<i64: 16, 128>}]} {
    %c0 = arith.constant 0 : index
    %c0_0 = arith.constant 0 : index
    %0 = vector.load %arg1[%c0, %c0_0] : memref<16x128xf32, #tpu.memory_space<vmem>>, vector<16x128xf32>
    %1 = arith.truncf %0 : vector<16x128xf32> to vector<16x128xbf16>
    %c0_1 = arith.constant 0 : index
    %c0_2 = arith.constant 0 : index
    %2 = vector.load %arg3[%c0_1, %c0_2] : memref<128x384xbf16, #tpu.memory_space<vmem>>, vector<128x384xbf16>
    %cst = arith.constant dense<0.000000e+00> : vector<16x384xf32>
    %3 = tpu.matmul %1, %2, %cst {dimension_numbers = #tpu.dot_dimension_numbers<[1], [0], [0], [1], [0, 0, 1, 1], [], []>} : vector<16x128xbf16>, vector<128x384xbf16>, vector<16x384xf32> -> vector<16x384xf32>
    %c0_3 = arith.constant 0 : index
    %c0_4 = arith.constant 0 : index
    %4 = vector.load %arg2[%c0_3, %c0_4] : memref<16x16xi32, #tpu.memory_space<vmem>>, vector<16x16xi32>
    %c0_i32 = arith.constant 0 : i32
    %5 = vector.broadcast %c0_i32 : i32 to vector<16x16xi32>
    %6 = arith.cmpi ne, %4, %5 : vector<16x16xi32>
    %7 = vector.extract_strided_slice %3 {offsets = [0, 0], sizes = [16, 64], strides = [1, 1]} : vector<16x384xf32> to vector<16x64xf32>
    %8 = arith.truncf %7 : vector<16x64xf32> to vector<16x64xbf16>
    %9 = vector.extract_strided_slice %3 {offsets = [0, 128], sizes = [16, 64], strides = [1, 1]} : vector<16x384xf32> to vector<16x64xf32>
    %10 = arith.truncf %9 : vector<16x64xf32> to vector<16x64xbf16>
    %11 = vector.extract_strided_slice %3 {offsets = [0, 256], sizes = [16, 64], strides = [1, 1]} : vector<16x384xf32> to vector<16x64xf32>
    %12 = arith.truncf %11 : vector<16x64xf32> to vector<16x64xbf16>
    %cst_5 = arith.constant dense<0.000000e+00> : vector<16x16xf32>
    %13 = tpu.matmul %8, %10, %cst_5 {dimension_numbers = #tpu.dot_dimension_numbers<[1], [1], [0], [0], [0, 0, 1, 0], [], []>} : vector<16x64xbf16>, vector<16x64xbf16>, vector<16x16xf32> -> vector<16x16xf32>
    %cst_6 = arith.constant 1.250000e-01 : f32
    %14 = vector.broadcast %cst_6 : f32 to vector<16x16xf32>
    %15 = arith.mulf %13, %14 : vector<16x16xf32>
    %cst_7 = arith.constant -1.000000e+07 : f32
    %16 = vector.broadcast %cst_7 : f32 to vector<16x16xf32>
    %17 = arith.select %6, %16, %15 : vector<16x16xi1>, vector<16x16xf32>
    %cst_8 = arith.constant dense<0xFF800000> : vector<16xf32>
    %18 = vector.multi_reduction <maximumf>, %17, %cst_8 [1] : vector<16x16xf32> to vector<16xf32>
    %19 = vector.shape_cast %18 : vector<16xf32> to vector<16x1xf32>
    %20 = vector.broadcast %19 : vector<16x1xf32> to vector<16x16xf32>
    %21 = arith.subf %17, %20 : vector<16x16xf32>
    %22 = math.exp %21 : vector<16x16xf32>
    %cst_9 = arith.constant dense<0.000000e+00> : vector<16xf32>
    %23 = vector.multi_reduction <add>, %22, %cst_9 [1] : vector<16x16xf32> to vector<16xf32>
    %24 = vector.shape_cast %23 : vector<16xf32> to vector<16x1xf32>
    %25 = tpu.reciprocal %24 {approx = true} : vector<16x1xf32> -> vector<16x1xf32>
    %26 = vector.broadcast %25 : vector<16x1xf32> to vector<16x16xf32>
    %27 = arith.mulf %22, %26 : vector<16x16xf32>
    %28 = arith.truncf %27 : vector<16x16xf32> to vector<16x16xbf16>
    %cst_10 = arith.constant dense<0.000000e+00> : vector<16x64xf32>
    %29 = tpu.matmul %28, %12, %cst_10 {dimension_numbers = #tpu.dot_dimension_numbers<[1], [0], [0], [1], [0, 0, 1, 1], [], []>} : vector<16x16xbf16>, vector<16x64xbf16>, vector<16x64xf32> -> vector<16x64xf32>
    %c0_11 = arith.constant 0 : index
    %c0_12 = arith.constant 0 : index
    %30 = vector.load %arg12[%c0_11, %c0_12] : memref<16x128xf32, #tpu.memory_space<vmem>>, vector<16x64xf32>
    tpu.vector_store %arg12[%c0_11, %c0_12], %29 {strides = array<i32>} : memref<16x128xf32, #tpu.memory_space<vmem>>, vector<16x64xf32>,
    %31 = vector.extract_strided_slice %3 {offsets = [0, 64], sizes = [16, 64], strides = [1, 1]} : vector<16x384xf32> to vector<16x64xf32>
    %32 = arith.truncf %31 : vector<16x64xf32> to vector<16x64xbf16>
    %33 = vector.extract_strided_slice %3 {offsets = [0, 192], sizes = [16, 64], strides = [1, 1]} : vector<16x384xf32> to vector<16x64xf32>
    %34 = arith.truncf %33 : vector<16x64xf32> to vector<16x64xbf16>
    %35 = vector.extract_strided_slice %3 {offsets = [0, 320], sizes = [16, 64], strides = [1, 1]} : vector<16x384xf32> to vector<16x64xf32>
    %36 = arith.truncf %35 : vector<16x64xf32> to vector<16x64xbf16>
    %cst_13 = arith.constant dense<0.000000e+00> : vector<16x16xf32>
    %37 = tpu.matmul %32, %34, %cst_13 {dimension_numbers = #tpu.dot_dimension_numbers<[1], [1], [0], [0], [0, 0, 1, 0], [], []>} : vector<16x64xbf16>, vector<16x64xbf16>, vector<16x16xf32> -> vector<16x16xf32>
    %cst_14 = arith.constant 1.250000e-01 : f32
    %38 = vector.broadcast %cst_14 : f32 to vector<16x16xf32>
    %39 = arith.mulf %37, %38 : vector<16x16xf32>
    %cst_15 = arith.constant -1.000000e+07 : f32
    %40 = vector.broadcast %cst_15 : f32 to vector<16x16xf32>
    %41 = arith.select %6, %40, %39 : vector<16x16xi1>, vector<16x16xf32>
    %cst_16 = arith.constant dense<0xFF800000> : vector<16xf32>
    %42 = vector.multi_reduction <maximumf>, %41, %cst_16 [1] : vector<16x16xf32> to vector<16xf32>
    %43 = vector.shape_cast %42 : vector<16xf32> to vector<16x1xf32>
    %44 = vector.broadcast %43 : vector<16x1xf32> to vector<16x16xf32>
    %45 = arith.subf %41, %44 : vector<16x16xf32>
    %46 = math.exp %45 : vector<16x16xf32>
    %cst_17 = arith.constant dense<0.000000e+00> : vector<16xf32>
    %47 = vector.multi_reduction <add>, %46, %cst_17 [1] : vector<16x16xf32> to vector<16xf32>
    %48 = vector.shape_cast %47 : vector<16xf32> to vector<16x1xf32>
    %49 = tpu.reciprocal %48 {approx = true} : vector<16x1xf32> -> vector<16x1xf32>
    %50 = vector.broadcast %49 : vector<16x1xf32> to vector<16x16xf32>
    %51 = arith.mulf %46, %50 : vector<16x16xf32>
    %52 = arith.truncf %51 : vector<16x16xf32> to vector<16x16xbf16>
    %cst_18 = arith.constant dense<0.000000e+00> : vector<16x64xf32>
    %53 = tpu.matmul %52, %36, %cst_18 {dimension_numbers = #tpu.dot_dimension_numbers<[1], [0], [0], [1], [0, 0, 1, 1], [], []>} : vector<16x16xbf16>, vector<16x64xbf16>, vector<16x64xf32> -> vector<16x64xf32>
    %c0_19 = arith.constant 0 : index
    %c64 = arith.constant 64 : index
    %54 = vector.load %arg12[%c0_19, %c64] : memref<16x128xf32, #tpu.memory_space<vmem>>, vector<16x64xf32>
    tpu.vector_store %arg12[%c0_19, %c64], %53 {strides = array<i32>} : memref<16x128xf32, #tpu.memory_space<vmem>>, vector<16x64xf32>,
    %c0_20 = arith.constant 0 : index
    %c0_21 = arith.constant 0 : index
    %55 = vector.load %arg12[%c0_20, %c0_21] : memref<16x128xf32, #tpu.memory_space<vmem>>, vector<16x128xf32>
    %56 = arith.truncf %55 : vector<16x128xf32> to vector<16x128xbf16>
    %c0_22 = arith.constant 0 : index
    %c0_23 = arith.constant 0 : index
    %57 = vector.load %arg4[%c0_22, %c0_23] : memref<128x128xbf16, #tpu.memory_space<vmem>>, vector<128x128xbf16>
    %cst_24 = arith.constant dense<0.000000e+00> : vector<16x128xf32>
    %58 = tpu.matmul %56, %57, %cst_24 {dimension_numbers = #tpu.dot_dimension_numbers<[1], [0], [0], [1], [0, 0, 1, 1], [], []>} : vector<16x128xbf16>, vector<128x128xbf16>, vector<16x128xf32> -> vector<16x128xf32>
    %59 = arith.addf %58, %0 : vector<16x128xf32>
    %c0_25 = arith.constant 0 : index
    %c0_26 = arith.constant 0 : index
    %60 = vector.load %arg5[%c0_25, %c0_26] : memref<1x128xf32, #tpu.memory_space<vmem>>, vector<1x128xf32>
    %c0_27 = arith.constant 0 : index
    %c0_28 = arith.constant 0 : index
    %61 = vector.load %arg6[%c0_27, %c0_28] : memref<1x128xf32, #tpu.memory_space<vmem>>, vector<1x128xf32>
    %cst_29 = arith.constant dense<0.000000e+00> : vector<16xf32>
    %62 = vector.multi_reduction <add>, %59, %cst_29 [1] : vector<16x128xf32> to vector<16xf32>
    %63 = vector.shape_cast %62 : vector<16xf32> to vector<16x1xf32>
    %cst_30 = arith.constant 1.280000e+02 : f32
    %64 = vector.broadcast %cst_30 : f32 to vector<16x1xf32>
    %65 = arith.divf %63, %64 : vector<16x1xf32>
    %66 = vector.broadcast %65 : vector<16x1xf32> to vector<16x128xf32>
    %67 = arith.subf %59, %66 : vector<16x128xf32>
    %68 = arith.mulf %67, %67 : vector<16x128xf32>
    %cst_31 = arith.constant dense<0.000000e+00> : vector<16xf32>
    %69 = vector.multi_reduction <add>, %68, %cst_31 [1] : vector<16x128xf32> to vector<16xf32>
    %70 = vector.shape_cast %69 : vector<16xf32> to vector<16x1xf32>
    %cst_32 = arith.constant 1.280000e+02 : f32
    %71 = vector.broadcast %cst_32 : f32 to vector<16x1xf32>
    %72 = arith.divf %70, %71 : vector<16x1xf32>
    %73 = vector.broadcast %65 : vector<16x1xf32> to vector<16x128xf32>
    %74 = arith.subf %59, %73 : vector<16x128xf32>
    %cst_33 = arith.constant 9.99999974E-6 : f32
    %75 = vector.broadcast %cst_33 : f32 to vector<16x1xf32>
    %76 = arith.addf %72, %75 : vector<16x1xf32>
    %77 = math.rsqrt %76 : vector<16x1xf32>
    %78 = vector.broadcast %77 : vector<16x1xf32> to vector<16x128xf32>
    %79 = arith.mulf %74, %78 : vector<16x128xf32>
    %80 = vector.broadcast %60 : vector<1x128xf32> to vector<16x128xf32>
    %81 = arith.mulf %79, %80 : vector<16x128xf32>
    %82 = vector.broadcast %61 : vector<1x128xf32> to vector<16x128xf32>
    %83 = arith.addf %81, %82 : vector<16x128xf32>
    %84 = arith.truncf %83 : vector<16x128xf32> to vector<16x128xbf16>
    %c0_34 = arith.constant 0 : index
    %c0_35 = arith.constant 0 : index
    %85 = vector.load %arg7[%c0_34, %c0_35] : memref<128x2048xbf16, #tpu.memory_space<vmem>>, vector<128x2048xbf16>
    %cst_36 = arith.constant dense<0.000000e+00> : vector<16x2048xf32>
    %86 = tpu.matmul %84, %85, %cst_36 {dimension_numbers = #tpu.dot_dimension_numbers<[1], [0], [0], [1], [0, 0, 1, 1], [], []>} : vector<16x128xbf16>, vector<128x2048xbf16>, vector<16x2048xf32> -> vector<16x2048xf32>
    %cst_37 = arith.constant 0.000000e+00 : f32
    %87 = vector.broadcast %cst_37 : f32 to vector<16x2048xf32>
    %88 = arith.maximumf %86, %87 : vector<16x2048xf32>
    %89 = arith.truncf %88 : vector<16x2048xf32> to vector<16x2048xbf16>
    %c0_38 = arith.constant 0 : index
    %c0_39 = arith.constant 0 : index
    %90 = vector.load %arg8[%c0_38, %c0_39] : memref<2048x128xbf16, #tpu.memory_space<vmem>>, vector<2048x128xbf16>
    %cst_40 = arith.constant dense<0.000000e+00> : vector<16x128xf32>
    %91 = tpu.matmul %89, %90, %cst_40 {dimension_numbers = #tpu.dot_dimension_numbers<[1], [0], [0], [1], [0, 0, 1, 1], [], []>} : vector<16x2048xbf16>, vector<2048x128xbf16>, vector<16x128xf32> -> vector<16x128xf32>
    %92 = arith.addf %91, %83 : vector<16x128xf32>
    %c0_41 = arith.constant 0 : index
    %c0_42 = arith.constant 0 : index
    %93 = vector.load %arg9[%c0_41, %c0_42] : memref<1x128xf32, #tpu.memory_space<vmem>>, vector<1x128xf32>
    %c0_43 = arith.constant 0 : index
    %c0_44 = arith.constant 0 : index
    %94 = vector.load %arg10[%c0_43, %c0_44] : memref<1x128xf32, #tpu.memory_space<vmem>>, vector<1x128xf32>
    %cst_45 = arith.constant dense<0.000000e+00> : vector<16xf32>
    %95 = vector.multi_reduction <add>, %92, %cst_45 [1] : vector<16x128xf32> to vector<16xf32>
    %96 = vector.shape_cast %95 : vector<16xf32> to vector<16x1xf32>
    %cst_46 = arith.constant 1.280000e+02 : f32
    %97 = vector.broadcast %cst_46 : f32 to vector<16x1xf32>
    %98 = arith.divf %96, %97 : vector<16x1xf32>
    %99 = vector.broadcast %98 : vector<16x1xf32> to vector<16x128xf32>
    %100 = arith.subf %92, %99 : vector<16x128xf32>
    %101 = arith.mulf %100, %100 : vector<16x128xf32>
    %cst_47 = arith.constant dense<0.000000e+00> : vector<16xf32>
    %102 = vector.multi_reduction <add>, %101, %cst_47 [1] : vector<16x128xf32> to vector<16xf32>
    %103 = vector.shape_cast %102 : vector<16xf32> to vector<16x1xf32>
    %cst_48 = arith.constant 1.280000e+02 : f32
    %104 = vector.broadcast %cst_48 : f32 to vector<16x1xf32>
    %105 = arith.divf %103, %104 : vector<16x1xf32>
    %106 = vector.broadcast %98 : vector<16x1xf32> to vector<16x128xf32>
    %107 = arith.subf %92, %106 : vector<16x128xf32>
    %cst_49 = arith.constant 9.99999974E-6 : f32
    %108 = vector.broadcast %cst_49 : f32 to vector<16x1xf32>
    %109 = arith.addf %105, %108 : vector<16x1xf32>
    %110 = math.rsqrt %109 : vector<16x1xf32>
    %111 = vector.broadcast %110 : vector<16x1xf32> to vector<16x128xf32>
    %112 = arith.mulf %107, %111 : vector<16x128xf32>
    %113 = vector.broadcast %93 : vector<1x128xf32> to vector<16x128xf32>
    %114 = arith.mulf %112, %113 : vector<16x128xf32>
    %115 = vector.broadcast %94 : vector<1x128xf32> to vector<16x128xf32>
    %116 = arith.addf %114, %115 : vector<16x128xf32>
    %c0_50 = arith.constant 0 : index
    %c0_51 = arith.constant 0 : index
    %117 = vector.load %arg11[%c0_50, %c0_51] : memref<16x128xf32, #tpu.memory_space<vmem>>, vector<16x128xf32>
    tpu.vector_store %arg11[%c0_50, %c0_51], %116 {strides = array<i32>} : memref<16x128xf32, #tpu.memory_space<vmem>>, vector<16x128xf32>,
    return
  }
  func.func @transform_0(%arg0: i32) -> (i32, i32) {
    %c0_i32 = arith.constant 0 : i32
    %c0_i32_0 = arith.constant 0 : i32
    %c0_i32_1 = arith.constant 0 : i32
    return %c0_i32, %c0_i32_0 : i32, i32
  }
  func.func @transform_1(%arg0: i32) -> (i32, i32) {
    %c0_i32 = arith.constant 0 : i32
    %c0_i32_0 = arith.constant 0 : i32
    %c0_i32_1 = arith.constant 0 : i32
    return %c0_i32, %c0_i32_0 : i32, i32
  }
  func.func @transform_2(%arg0: i32) -> (i32, i32) {
    %c0_i32 = arith.constant 0 : i32
    %c0_i32_0 = arith.constant 0 : i32
    %c0_i32_1 = arith.constant 0 : i32
    return %c0_i32, %c0_i32_0 : i32, i32
  }
  func.func @transform_3(%arg0: i32) -> (i32, i32) {
    %c0_i32 = arith.constant 0 : i32
    %c0_i32_0 = arith.constant 0 : i32
    %c0_i32_1 = arith.constant 0 : i32
    return %c0_i32, %c0_i32_0 : i32, i32
  }
  func.func @transform_4(%arg0: i32) -> (i32, i32) {
    %c0_i32 = arith.constant 0 : i32
    %c0_i32_0 = arith.constant 0 : i32
    %c0_i32_1 = arith.constant 0 : i32
    return %c0_i32, %c0_i32_0 : i32, i32
  }
  func.func @transform_5(%arg0: i32) -> (i32, i32) {
    %c0_i32 = arith.constant 0 : i32
    %c0_i32_0 = arith.constant 0 : i32
    %c0_i32_1 = arith.constant 0 : i32
    return %c0_i32, %c0_i32_0 : i32, i32
  }
  func.func @transform_6(%arg0: i32) -> (i32, i32) {
    %c0_i32 = arith.constant 0 : i32
    %c0_i32_0 = arith.constant 0 : i32
    %c0_i32_1 = arith.constant 0 : i32
    return %c0_i32, %c0_i32_0 : i32, i32
  }
  func.func @transform_7(%arg0: i32) -> (i32, i32) {
    %c0_i32 = arith.constant 0 : i32
    %c0_i32_0 = arith.constant 0 : i32
    %c0_i32_1 = arith.constant 0 : i32
    return %c0_i32, %c0_i32_0 : i32, i32
  }
  func.func @transform_8(%arg0: i32) -> (i32, i32) {
    %c0_i32 = arith.constant 0 : i32
    %c0_i32_0 = arith.constant 0 : i32
    %c0_i32_1 = arith.constant 0 : i32
    return %c0_i32, %c0_i32_0 : i32, i32
  }
  func.func @transform_9(%arg0: i32) -> (i32, i32) {
    %c0_i32 = arith.constant 0 : i32
    %c0_i32_0 = arith.constant 0 : i32
    %c0_i32_1 = arith.constant 0 : i32
    return %c0_i32, %c0_i32_0 : i32, i32
  }
  func.func @transform_10(%arg0: i32) -> (i32, i32) {
    %c0_i32 = arith.constant 0 : i32
    %c0_i32_0 = arith.constant 0 : i32
    %c0_i32_1 = arith.constant 0 : i32
    return %c0_i32, %c0_i32_0 : i32, i32
  }
}

</mosaic_0001>

<bundles_post_ra>
// kernel: tpu_custom_call.1
= control target key start
LH: loop header
LB: loop body
LE: loop exit
PB: predicated region body
PF: predicated region fallthrough
CT: control target
= control target key end

     0   :  { %15 = vsyncpa [#allocation4], 0  ;;  %s4506_s0 = inlined_call_operand.hbm [shape: f32[16,128], index: 0, kind: input, shape index: {}]   ;;  %s4507_s1 = inlined_call_operand.hbm [shape: s32[16,16], index: 1, kind: input, shape index: {}]   ;;  %s4508_s2 = inlined_call_operand.hbm [shape: bf16[128,384], index: 2, kind: input, shape index: {}]   ;;  %s4509_s3 = inlined_call_operand.hbm [shape: bf16[128,128], index: 3, kind: input, shape index: {}]   ;;  %s4510_s4 = inlined_call_operand.vmem [shape: f32[1,128], index: 4, kind: input, shape index: {}]   ;;  %s4511_s5 = inlined_call_operand.vmem [shape: f32[1,128], index: 5, kind: input, shape index: {}]   ;;  %s4512_s6 = inlined_call_operand.hbm [shape: bf16[128,2048], index: 6, kind: input, shape index: {}]   ;;  %s4513_s7 = inlined_call_operand.hbm [shape: bf16[2048,128], index: 7, kind: input, shape index: {}]   ;;  %s4514_s8 = inlined_call_operand.vmem [shape: f32[1,128], index: 8, kind: input, shape index: {}]   ;;  %s4515_s9 = inlined_call_operand.vmem [shape: f32[1,128], index: 9, kind: input, shape index: {}]   ;;  %s4516_s10 = inlined_call_operand.hbm [shape: f32[16,128], index: 10, kind: output, shape index: {}]  }
   0x1   :  { %16 = vsyncpa [#allocation7], 0 }
   0x2   :  { %17 = vsyncpa [#allocation10], 0 }
   0x3   :  { %18 = vsyncpa [#allocation13], 0 }
   0x4   :  { %19 = vsyncpa [#allocation5], 0  ;;  %s4279_s13 = smov [#allocation6]   ;;  %s4280_s15 = smov [#allocation9]  }
   0x5   :  { %s37_s14 = sshll.u32 %s4279_s13, 4  ;;  %s61_s16 = sshll.u32 %s4280_s15, 4  ;;  %s38_s14 = int_to_ptr.vmem [resolvable:$true] %s37_s14  ;;  %s62_s16 = int_to_ptr.vmem [resolvable:$true] %s61_s16 }
   0x6   :  { %s4137_s17 = scalar_lea.vmem %s38_s14, 256  ;;  %p4142_p1 = scmp.lt.s32.totalorder %s38_s14, %s38_s14 }
   0x7   :  { %p4138_p0 = scmp.ne.s32.totalorder %s38_s14, %s4137_s17  ;;  %p4143_p2 = scmp.lt.s32.totalorder %s4137_s17, %s4137_s17 }
   0x9   :  { %p4144_p3 = por %p4143_p2, %p4142_p1 }
   0xb   :  { %p4145_p4 = pnand %p4144_p3, %p4138_p0 }
   0xd   :  { %4148 = shalt.err (!%p4145_p4)
}
   0xe   :  { %s4281_s18 = smov 128   ;;  %s4282_s19 = smov 8  }
   0xf   :  { %43 = dma.hbm_to_vmem [thread:$0]  %s4507_s1, 256, %s38_s14, [#allocation7], %s4281_s18, %s4281_s18, %s4282_s19  }
  0x10   :  { %s4157_s22 = scalar_lea.vmem %s62_s16, 1024  ;;  %p4162_p6 = scmp.lt.s32.totalorder %s62_s16, %s62_s16 }
  0x11   :  { %p4158_p5 = scmp.ne.s32.totalorder %s62_s16, %s4157_s22  ;;  %p4163_p7 = scmp.lt.s32.totalorder %s4157_s22, %s4157_s22 }
  0x13   :  { %p4164_p8 = por %p4163_p7, %p4162_p6 }
  0x15   :  { %p4165_p9 = pnand %p4164_p8, %p4158_p5 }
  0x17   :  { %4168 = shalt.err (!%p4165_p9)
}
  0x18   :  { %s4283_s23 = smov 64   ;;  %s4284_s24 = smov 4  }
  0x19   :  { %67 = dma.hbm_to_vmem [thread:$0]  %s4509_s3, 1024, %s62_s16, [#allocation10], %s4283_s23, %s4283_s23, %s4284_s24  }
  0x1a   :  { %s4285_s27 = smov [#allocation3]   ;;  %s4286_s29 = smov [#allocation8]  }
  0x1b   :  { %s25_s28 = sshll.u32 %s4285_s27, 4  ;;  %s49_s1 = sshll.u32 %s4286_s29, 4  ;;  %s26_s28 = int_to_ptr.vmem [resolvable:$true] %s25_s28  ;;  %s50_s1 = int_to_ptr.vmem [resolvable:$true] %s49_s1 }
  0x1c   :  { %s4177_s30 = scalar_lea.vmem %s26_s28, 256  ;;  %p4182_p11 = scmp.lt.s32.totalorder %s26_s28, %s26_s28 }
  0x1d   :  { %p4178_p10 = scmp.ne.s32.totalorder %s26_s28, %s4177_s30  ;;  %p4183_p12 = scmp.lt.s32.totalorder %s4177_s30, %s4177_s30 }
  0x1f   :  { %p4184_p13 = por %p4183_p12, %p4182_p11 }
  0x21   :  { %p4185_p0 = pnand %p4184_p13, %p4178_p10 }
  0x23   :  { %4188 = shalt.err (!%p4185_p0)
}
  0x24   :  { %31 = dma.hbm_to_vmem [thread:$0]  %s4506_s0, 256, %s26_s28, [#allocation4], %s4281_s18, %s4281_s18, %s4282_s19  }
  0x25   :  { %s4197_s3 = scalar_lea.vmem %s50_s1, 3072  ;;  %p4202_p2 = scmp.lt.s32.totalorder %s50_s1, %s50_s1 }
  0x26   :  { %p4198_p1 = scmp.ne.s32.totalorder %s50_s1, %s4197_s3  ;;  %p4203_p3 = scmp.lt.s32.totalorder %s4197_s3, %s4197_s3 }
  0x28   :  { %p4204_p4 = por %p4203_p3, %p4202_p2 }
  0x2a   :  { %p4205_p5 = pnand %p4204_p4, %p4198_p1 }
  0x2c   :  { %4208 = shalt.err (!%p4205_p5)
}
  0x2d   :  { %s4287_s13 = smov 192   ;;  %s4288_s14 = smov 12  }
  0x2e   :  { %55 = dma.hbm_to_vmem [thread:$0]  %s4508_s2, 3072, %s50_s1, [#allocation7], %s4287_s13, %s4287_s13, %s4288_s14  }
  0x2f   :  { %s4289_s17 = smov [#allocation11]   ;;  %s4290_s21 = smov [#allocation12]  }
  0x30   :  { %s77_s20 = sshll.u32 %s4289_s17, 4  ;;  %s89_s22 = sshll.u32 %s4290_s21, 4  ;;  %s78_s20 = int_to_ptr.vmem [resolvable:$true] %s77_s20  ;;  %s90_s22 = int_to_ptr.vmem [resolvable:$true] %s89_s22 }
  0x31   :  { %s4217_s25 = scalar_lea.vmem %s78_s20, 16384  ;;  %p4222_p7 = scmp.lt.s32.totalorder %s78_s20, %s78_s20 }
  0x32   :  { %p4218_p6 = scmp.ne.s32.totalorder %s78_s20, %s4217_s25  ;;  %p4223_p8 = scmp.lt.s32.totalorder %s4217_s25, %s4217_s25 }
  0x34   :  { %p4224_p9 = por %p4223_p8, %p4222_p7 }
  0x36   :  { %p4225_p10 = pnand %p4224_p9, %p4218_p6 }
  0x38   :  { %4228 = shalt.err (!%p4225_p10)
}
  0x39   :  { %s4291_s0 = smov 1024   ;;  %s4237_s2 = scalar_lea.vmem %s90_s22, 16384 }
  0x3a   :  { %83 = dma.hbm_to_vmem [thread:$0]  %s4512_s6, 16384, %s78_s20, [#allocation10], %s4291_s0, %s4291_s0, %s4283_s23  }
  0x3b   :  { %p4238_p11 = scmp.ne.s32.totalorder %s90_s22, %s4237_s2  ;;  %p4242_p12 = scmp.lt.s32.totalorder %s90_s22, %s90_s22 }
  0x3c   :  { %p4243_p13 = scmp.lt.s32.totalorder %s4237_s2, %s4237_s2 }
  0x3e   :  { %p4244_p0 = por %p4243_p13, %p4242_p12 }
  0x40   :  { %p4245_p1 = pnand %p4244_p0, %p4238_p11 }
  0x42   :  { %4248 = shalt.err (!%p4245_p1)
}
  0x43   :  { %95 = dma.hbm_to_vmem [thread:$0]  %s4513_s7, 16384, %s90_s22, [#allocation13], %s4283_s23, %s4283_s23, %s4284_s24  }
  0x44   :  { %4269 = dma.done.wait [#allocation4], 256  }
  0x45   :  { %4270 = vsyncadd [#allocation4], 4294967040 }
  0x46   :  { %4271 = dma.done.wait [#allocation7], 3328  }
  0x47   :  { %4272 = vsyncadd [#allocation7], 4294963968 }
  0x48   :  { %4273 = dma.done.wait [#allocation10], 17408  }
  0x49   :  { %4274 = vsyncadd [#allocation10], 4294949888 }
  0x4a   :  { %4275 = dma.done.wait [#allocation13], 16384  }
  0x4b   :  { %4276 = vsyncadd [#allocation13], 4294950912  ;;  %v4292_v0 = vmov 0   ;;  %v4293_v1 = vmov 0.0   ;;  %v3937_v2 = vld [vmem:[#allocation8 + $0xac] ss:$12 sps:$4 sm:$0xff]  }
  0x4c   :  { %314 = vmatprep.mubr.bf16.mxu0 %v4292_v0  ;;  %3856 = vmatprep.subr.bf16.mxu1 %v4293_v1  ;;  %v3939_v3 = vld [vmem:[#allocation8 + $0xa8] ss:$12 sps:$4 sm:$0xff]   ;;  %v3942_v5 = vld [vmem:[#allocation8 + $0x90] ss:$12 sps:$4 sm:$0xff]   ;;  %v3945_v7 = vld [vmem:[#allocation8 + $0x78] ss:$12 sps:$4 sm:$0xff]  }
  0x4d   :  { %282 = vmatprep.subr.bf16.mxu0 %v3937_v2  ;;  %v3940_v4 = vld [vmem:[#allocation8 + $0x94] ss:$12 sps:$4 sm:$0xff]   ;;  %v3943_v6 = vld [vmem:[#allocation8 + $0x7c] ss:$12 sps:$4 sm:$0xff]   ;;  %v3946_v8 = vld [vmem:[#allocation8 + $0x64] ss:$12 sps:$4 sm:$0xff]  }
  0x4e   :  { %283 = vmatpush1.bf16.msra.mxu0 %v3939_v3  ;;  %v3948_v9 = vld [vmem:[#allocation8 + $0x60] ss:$12 sps:$4 sm:$0xff]   ;;  %v3961_v11 = vld [vmem:[#allocation8 + $0xb0] ss:$12 sps:$4 sm:$0xff]   ;;  %v3962_v12 = vld [vmem:[#allocation8 + $0x98] ss:$12 sps:$4 sm:$0xff]  }
  0x4f   :  { %284 = vmatprep.subr.bf16.mxu0 %v3940_v4  ;;  %v3949_v10 = vld [vmem:[#allocation8 + $0x4c] ss:$12 sps:$4 sm:$0xff]   ;;  %3857 = vmatpush3.bf16.msra.mxu1 %v3961_v11  ;;  %v3951_v13 = vld [vmem:[#allocation8 + $0x48] ss:$12 sps:$4 sm:$0xff]   ;;  %v3954_v15 = vld [vmem:[#allocation8 + $0x30] ss:$12 sps:$4 sm:$0xff]  }
  0x50   :  { %3858 = vmatprep.subr.bf16.mxu1 %v4293_v1  ;;  %v3952_v14 = vld [vmem:[#allocation8 + $0x34] ss:$12 sps:$4 sm:$0xff]   ;;  %v3955_v16 = vld [vmem:[#allocation8 + $0x1c] ss:$12 sps:$4 sm:$0xff]   ;;  %v3957_v19 = vld [vmem:[#allocation8 + $0x18] ss:$12 sps:$4 sm:$0xff]  }
  0x51   :  { %v3963_v17 = vld [vmem:[#allocation8 + $0x80] ss:$12 sps:$4 sm:$0xff]   ;;  %v3964_v18 = vld [vmem:[#allocation8 + $0x68] ss:$12 sps:$4 sm:$0xff]   ;;  %v3958_v20 = vld [vmem:[#allocation8 + $0x4] ss:$12 sps:$4 sm:$0xff]  }
  0x52   :  { %285 = vmatpush1.bf16.msra.mxu0 %v3942_v5  ;;  %v3965_v21 = vld [vmem:[#allocation8 + $0x50] ss:$12 sps:$4 sm:$0xff]   ;;  %v3960_v22 = vld [vmem:[#allocation8] ss:$12 sps:$4 sm:$0xff]   ;;  %v3966_v25 = vld [vmem:[#allocation8 + $0x38] ss:$12 sps:$4 sm:$0xff]  }
  0x53   :  { %286 = vmatprep.subr.bf16.mxu0 %v3943_v6  ;;  %3859 = vmatpush3.bf16.msra.mxu1 %v3962_v12  ;;  %v4387_v23 = vld [vmem:[#allocation3] sm:$0xff]  ;;  %v4389_v24 = vld [vmem:[#allocation3 + $0x8] sm:$0xff]  ;;  %vm4294_vm0 = vmmov 0   ;;  %vm373_vm1 = vcmask 523264   ;;  %v366_v41 = vld [vmem:[#allocation6] sm:$0xff]  ;;  %vm425_vm3 = vcmask 130048  }
  0x54   :  { %3860 = vmatprep.subr.bf16.mxu1 %v4293_v1  ;;  %v121_v26 = vpack.c.bf16 %v4389_v24, %v4387_v23  ;;  %v3967_v27 = vld [vmem:[#allocation8 + $0x20] ss:$12 sps:$4 sm:$0xff]   ;;  %v3968_v28 = vld [vmem:[#allocation8 + $0x8] ss:$12 sps:$4 sm:$0xff]   ;;  %3872 = vmatprep.mubr.msk.bf16.mxu1 %vm4294_vm0, %v4293_v1  ;;  %vm368_vm2 = vcmp.ne.s32.totalorder %v366_v41, 0  ;;  %v367_v44 = vld [vmem:[#allocation6 + $0x8] sm:$0xff] }
  0x55   :  { %vm369_vm4 = vcmp.ne.s32.totalorder %v367_v44, 0  ;;  %vm631_vm5 = vcmask 1048064   ;;  %s4295_s11 = smov [#allocation14]  }
  0x56   :  { %287 = vmatpush1.bf16.msra.mxu0 %v3945_v7  ;;  %s3343_s12 = sshll.u32 %s4295_s11, 4  ;;  %s3344_s12 = int_to_ptr.vmem [resolvable:$true] %s3343_s12 }
  0x57   :  { %288 = vmatprep.subr.bf16.mxu0 %v3946_v8  ;;  %3861 = vmatpush3.bf16.msra.mxu1 %v3963_v17  ;;  %s4249_s3 = scalar_lea.vmem %s3344_s12, 256  ;;  %p4254_p3 = scmp.lt.s32.totalorder %s3344_s12, %s3344_s12 }
  0x58   :  { %3862 = vmatprep.subr.bf16.mxu1 %v4293_v1  ;;  %p4250_p2 = scmp.ne.s32.totalorder %s3344_s12, %s4249_s3  ;;  %p4255_p4 = scmp.lt.s32.totalorder %s4249_s3, %s4249_s3 }
  0x5a   :  { %289 = vmatpush1.bf16.msra.mxu0 %v3948_v9  ;;  %p4256_p5 = por %p4255_p4, %p4254_p3 }
  0x5b   :  { %290 = vmatprep.subr.bf16.mxu0 %v3949_v10  ;;  %3863 = vmatpush3.bf16.msra.mxu1 %v3964_v18 }
  0x5c   :  { %3864 = vmatprep.subr.bf16.mxu1 %v4293_v1  ;;  %p4257_p6 = pnand %p4256_p5, %p4250_p2 }
  0x5e   :  { %291 = vmatpush1.bf16.msra.mxu0 %v3951_v13 }
  0x5f   :  { %292 = vmatprep.subr.bf16.mxu0 %v3952_v14  ;;  %3865 = vmatpush3.bf16.msra.mxu1 %v3965_v21 }
  0x60   :  { %3866 = vmatprep.subr.bf16.mxu1 %v4293_v1 }
  0x62   :  { %293 = vmatpush1.bf16.msra.mxu0 %v3954_v15 }
  0x63   :  { %294 = vmatprep.subr.bf16.mxu0 %v3955_v16  ;;  %3867 = vmatpush3.bf16.msra.mxu1 %v3966_v25 }
  0x64   :  { %3868 = vmatprep.subr.bf16.mxu1 %v4293_v1 }
  0x66   :  { %295 = vmatpush1.bf16.msra.mxu0 %v3957_v19 }
  0x67   :  { %296 = vmatprep.subr.bf16.mxu0 %v3958_v20  ;;  %3869 = vmatpush3.bf16.msra.mxu1 %v3967_v27 }
  0x68   :  { %3870 = vmatprep.subr.bf16.mxu1 %v4293_v1 }
  0x6a   :  { %297 = vmatpush1.bf16.msra.mxu0 %v3960_v22 }
  0x6b   :  { %3900 = vmatprep.subr.bf16.mxu0 %v4293_v1  ;;  %3871 = vmatpush3.bf16.msra.mxu1 %v3968_v28 }
  0x6c   :  { %3876 = vmatprep.subr.bf16.mxu1 %v4293_v1 }
  0x6d   :  { %315 = vmatmul.mubr.bf16.vlgmr.msra.gmra.mxu0 %v121_v26 }
  0x6e   :  { %3916 = vmatprep.mubr.msk.bf16.mxu0 %vm4294_vm0, %v4293_v1  ;;  %3873 = vmatmul.mubr.bf16.vlgmr.msra.gmra.mxu1 %v121_v26 }
  0x6f   :  { %3878 = vmatprep.mubr.msk.bf16.mxu1 %vm4294_vm0, %v4293_v1 }
 0x12d   :  { %v316_v29 = vpop.f32.mrf.mxu0 }
 0x12e   :  { %v359_v36 = vpop.f32.mrf.mxu1 }
 0x12f   :  { %v318_v30 = vpop.f32.mrf.mxu0 }
 0x130   :  { %v3874_v37 = vpop.f32.mrf.mxu1 }
 0x131   :  { %v320_v31 = vpop.f32.mrf.mxu0 }
 0x132   :  { %v370_v35 = vpack.c.bf16 %v320_v31, %v316_v29  ;;  %v362_v38 = vpop.f32.mrf.mxu1 }
 0x133   :  { %v322_v32 = vpop.f32.mrf.mxu0  ;;  %v4410_v39 = vpack.c.bf16 %v362_v38, %v359_v36 }
 0x134   :  { %v371_v33 = vpack.c.bf16 %v322_v32, %v318_v30  ;;  %v3875_v40 = vpop.f32.mrf.mxu1 }
 0x136   :  { %v378_v34 = vsel %vm373_vm1, %v371_v33, 0 }
 0x137   :  { %3877 = vmatpush3.bf16.xpose.msra.mxu1 %v378_v34 }
 0x138   :  { %3882 = vmatprep.subr.bf16.mxu1 %v4293_v1 }
 0x13e   :  { %3879 = vmatmul.mubr.msk.bf16.vlgmr.msra.gmra.mxu1 %vm373_vm1, %v370_v35 }
 0x13f   :  { %3884 = vmatprep.mubr.msk.bf16.mxu1 %vm4294_vm0, %v4293_v1  ;;  %3883 = vmatpush3.bf16.msra.mxu1 %v4410_v39 }
 0x140   :  { %3888 = vmatprep.subr.bf16.mxu1 %v4293_v1 }
 0x1fe   :  { %v414_v42 = vpop.f32.mrf.mxu1 }
 0x1ff   :  { %v421_v43 = vmul.f32 0.125, %v414_v42 }
 0x200   :  { %v3880_v45 = vpop.f32.mrf.mxu1 }
 0x201   :  { %v423_v46 = vsel %vm368_vm2, -10000000.0, %v421_v43 }
 0x202   :  { %v417_v47 = vpop.f32.mrf.mxu1  ;;  %v426_v48 = vsel %vm425_vm3, %v423_v46, -inf }
 0x203   :  { %v422_v49 = vmul.f32 0.125, %v417_v47  ;;  %427 = vmax.xlane.f32.xlu0 %v426_v48  ;;  %v3970_v47 = vld [vmem:[#allocation9 + $0x30] sm:$0xff]   ;;  %v3972_v48 = vld [vmem:[#allocation9 + $0x20] sm:$0xff]  }
 0x204   :  { %v3881_v50 = vpop.f32.mrf.mxu1 }
 0x205   :  { %v424_v51 = vsel %vm369_vm4, -10000000.0, %v422_v49  ;;  %v3973_v49 = vld [vmem:[#allocation9 + $0x18] sm:$0xff]   ;;  %v3974_v50 = vld [vmem:[#allocation9 + $0x10] sm:$0xff]  }
 0x206   :  { %v429_v52 = vsel %vm425_vm3, %v424_v51, -inf }
 0x207   :  { %430 = vmax.xlane.f32.xlu0 %v429_v52  ;;  %v3976_v52 = vld [vmem:[#allocation9] sm:$0xff]  }
 0x21d   :  { %499 = vrot.lane.b32.xlu0 %v371_v33, %s4283_s23 }
 0x28c   :  { %v428_v53 = vpop.xlane.xlu0 %427 }
 0x28d   :  { %v432_v54 = vsub.f32 %v423_v46, %v428_v53  ;;  %v3969_v46 = vld [vmem:[#allocation9 + $0x38] sm:$0xff]  }
 0x28e   :  { %3901 = vmatpush3.bf16.msra.mxu0 %v3969_v46  ;;  %v832_v46 = vld [vmem:[#allocation11 + $0x180] sm:$0xff] }
 0x28f   :  { %v434_v55 = vmul.f32 1.442695, %v432_v54  ;;  %3902 = vmatprep.subr.bf16.mxu0 %v4293_v1 }
 0x290   :  { %v431_v56 = vpop.xlane.xlu0 %430 }
 0x291   :  { %4105 = vpow2.f32 %v434_v55  ;;  %v433_v57 = vsub.f32 %v424_v51, %v431_v56  ;;  %v3975_v51 = vld [vmem:[#allocation9 + $0x8] sm:$0xff]  }
 0x292   :  { %3903 = vmatpush3.bf16.msra.mxu0 %v3970_v47  ;;  %v840_v47 = vld [vmem:[#allocation11 + $0x1c0] sm:$0xff] }
 0x293   :  { %v436_v58 = vmul.f32 1.442695, %v433_v57  ;;  %3904 = vmatprep.subr.bf16.mxu0 %v4293_v1 }
 0x294   :  { %v500_v7 = vpop.permute.xlu0 %499 }
 0x295   :  { %4107 = vpow2.f32 %v436_v58  ;;  %v505_v9 = vsel %vm373_vm1, %v500_v7, 0  ;;  %v897_v7 = vld [vmem:[#allocation11 + $0x388] sm:$0xff] }
 0x29e   :  { %v4106_v59 = vpop.eup %4105 }
 0x29f   :  { %v438_v60 = vsel %vm425_vm3, %v4106_v59, 0.0 }
 0x2a0   :  { %439 = vadd.xlane.f32.xlu1 %v438_v60 }
 0x2a2   :  { %v4108_v61 = vpop.eup %4107 }
 0x2a3   :  { %v441_v62 = vsel %vm425_vm3, %v4108_v61, 0.0 }
 0x2a4   :  { %442 = vadd.xlane.f32.xlu1 %v441_v62 }
 0x2b5   :  { %496 = vrot.lane.b32.xlu1 %v370_v35, %s4283_s23 }
 0x329   :  { %v440_v63 = vpop.xlane.xlu1 %439 }
 0x32a   :  { %4109 = vrcp.f32 %v440_v63 }
 0x32d   :  { %v443_v2 = vpop.xlane.xlu1 %442 }
 0x32e   :  { %4111 = vrcp.f32 %v443_v2 }
 0x331   :  { %v497_v10 = vpop.permute.xlu1 %496 }
 0x337   :  { %v4110_v3 = vpop.eup %4109 }
 0x338   :  { %v446_v5 = vmul.f32 %v4110_v3, %v4106_v59 }
 0x33b   :  { %v4112_v4 = vpop.eup %4111 }
 0x33c   :  { %v447_v6 = vmul.f32 %v4112_v4, %v4108_v61 }
 0x33e   :  { %v448_v8 = vpack.c.bf16 %v447_v6, %v446_v5  ;;  %v896_v5 = vld [vmem:[#allocation11 + $0x380] sm:$0xff] }
 0x33f   :  { %v904_v6 = vld [vmem:[#allocation11 + $0x3c0] sm:$0xff] }
 0x340   :  { %3885 = vmatmul.mubr.msk.bf16.vlgmr.msra.gmra.mxu1 %vm425_vm3, %v448_v8  ;;  %v3508_v8 = vcombine.low %v896_v5, %v904_v6 }
 0x341   :  { %3889 = vmatpush3.bf16.xpose.msra.mxu1 %v505_v9  ;;  %3890 = vmatprep.mubr.msk.bf16.mxu1 %vm4294_vm0, %v4293_v1  ;;  %v3509_v9 = vcombine.high %v896_v5, %v904_v6  ;;  %v784_v6 = vld [vmem:[#allocation11] sm:$0xff] }
 0x342   :  { %3894 = vmatprep.subr.bf16.mxu1 %v4293_v1 }
 0x348   :  { %3891 = vmatmul.mubr.msk.bf16.vlgmr.msra.gmra.mxu1 %vm373_vm1, %v497_v10  ;;  %v905_v10 = vld [vmem:[#allocation11 + $0x3c8] sm:$0xff] }
 0x349   :  { %3896 = vmatprep.mubr.msk.bf16.mxu1 %vm4294_vm0, %v4293_v1 }
 0x400   :  { %v486_v11 = vpop.f32.mrf.mxu1 }
 0x401   :  { %493 = vst.msk [vmem:[#allocation2] sm:$0xff] %vm373_vm1, %v486_v11  ;;  %v3510_v11 = vcombine.low %v897_v7, %v905_v10 }
 0x402   :  { %v3886_v12 = vpop.f32.mrf.mxu1 }
 0x403   :  { %v3511_v12 = vcombine.high %v897_v7, %v905_v10  ;;  %v792_v7 = vld [vmem:[#allocation11 + $0x40] sm:$0xff]  ;;  %v793_v10 = vld [vmem:[#allocation11 + $0x48] sm:$0xff] }
 0x404   :  { %v489_v13 = vpop.f32.mrf.mxu1 }
 0x405   :  { %494 = vst.msk [vmem:[#allocation2 + $0x8] sm:$0xff] %vm373_vm1, %v489_v13 }
 0x406   :  { %v3887_v14 = vpop.f32.mrf.mxu1 }
 0x408   :  { %v541_v15 = vpop.f32.mrf.mxu1 }
 0x409   :  { %v548_v16 = vmul.f32 0.125, %v541_v15 }
 0x40a   :  { %v3892_v17 = vpop.f32.mrf.mxu1 }
 0x40b   :  { %v550_v18 = vsel %vm368_vm2, -10000000.0, %v548_v16 }
 0x40c   :  { %v544_v19 = vpop.f32.mrf.mxu1  ;;  %v552_v20 = vsel %vm425_vm3, %v550_v18, -inf }
 0x40d   :  { %v549_v21 = vmul.f32 0.125, %v544_v19  ;;  %553 = vmax.xlane.f32.xlu1 %v552_v20  ;;  %v880_v19 = vld [vmem:[#allocation11 + $0x300] sm:$0xff] }
 0x40e   :  { %v3893_v22 = vpop.f32.mrf.mxu1  ;;  %v888_v20 = vld [vmem:[#allocation11 + $0x340] sm:$0xff] }
 0x40f   :  { %v551_v25 = vsel %vm369_vm4, -10000000.0, %v549_v21  ;;  %v881_v21 = vld [vmem:[#allocation11 + $0x308] sm:$0xff]  ;;  %v3493_v22 = vcombine.high %v880_v19, %v888_v20 }
 0x410   :  { %v555_v26 = vsel %vm425_vm3, %v551_v25, -inf }
 0x411   :  { %556 = vmax.xlane.f32.xlu0 %v555_v26  ;;  %v3492_v26 = vcombine.low %v880_v19, %v888_v20  ;;  %v907_v19 = vld [vmem:[#allocation11 + $0x3d8] sm:$0xff] }
 0x496   :  { %v554_v27 = vpop.xlane.xlu1 %553 }
 0x497   :  { %v558_v28 = vsub.f32 %v550_v18, %v554_v27 }
 0x499   :  { %v560_v29 = vmul.f32 1.442695, %v558_v28 }
 0x49a   :  { %v557_v30 = vpop.xlane.xlu0 %556 }
 0x49b   :  { %4113 = vpow2.f32 %v560_v29  ;;  %v559_v31 = vsub.f32 %v551_v25, %v557_v30  ;;  %v889_v25 = vld [vmem:[#allocation11 + $0x348] sm:$0xff]  ;;  %v864_v29 = vld [vmem:[#allocation11 + $0x280] sm:$0xff] }
 0x49c   :  { %v3494_v27 = vcombine.low %v881_v21, %v889_v25  ;;  %v3495_v28 = vcombine.high %v881_v21, %v889_v25  ;;  %v872_v30 = vld [vmem:[#allocation11 + $0x2c0] sm:$0xff] }
 0x49d   :  { %v562_v32 = vmul.f32 1.442695, %v559_v31  ;;  %v865_v31 = vld [vmem:[#allocation11 + $0x288] sm:$0xff] }
 0x49f   :  { %4115 = vpow2.f32 %v562_v32  ;;  %v3477_v32 = vcombine.high %v864_v29, %v872_v30 }
 0x4a8   :  { %v4114_v33 = vpop.eup %4113 }
 0x4a9   :  { %v564_v34 = vsel %vm425_vm3, %v4114_v33, 0.0 }
 0x4aa   :  { %565 = vadd.xlane.f32.xlu0 %v564_v34  ;;  %v3476_v34 = vcombine.low %v864_v29, %v872_v30 }
 0x4ac   :  { %v4116_v35 = vpop.eup %4115 }
 0x4ad   :  { %v567_v36 = vsel %vm425_vm3, %v4116_v35, 0.0 }
 0x4ae   :  { %568 = vadd.xlane.f32.xlu1 %v567_v36 }
 0x4c0   :  { %576 = vrot.lane.b32.xlu0 %v4410_v39, %s4283_s23  ;;  %v3971_v39 = vld [vmem:[#allocation9 + $0x28] sm:$0xff]  }
 0x4c1   :  { %3905 = vmatpush3.bf16.msra.mxu0 %v3971_v39  ;;  %v833_v39 = vld [vmem:[#allocation11 + $0x188] sm:$0xff] }
 0x4c2   :  { %3906 = vmatprep.subr.bf16.mxu0 %v4293_v1 }
 0x4c5   :  { %3907 = vmatpush3.bf16.msra.mxu0 %v3972_v48  ;;  %v3445_v48 = vcombine.high %v832_v46, %v840_v47 }
 0x4c6   :  { %3908 = vmatprep.subr.bf16.mxu0 %v4293_v1 }
 0x4c9   :  { %3909 = vmatpush3.bf16.msra.mxu0 %v3973_v49  ;;  %v841_v49 = vld [vmem:[#allocation11 + $0x1c8] sm:$0xff] }
 0x4ca   :  { %3910 = vmatprep.subr.bf16.mxu0 %v4293_v1 }
 0x4cd   :  { %3911 = vmatpush3.bf16.msra.mxu0 %v3974_v50  ;;  %v3444_v50 = vcombine.low %v832_v46, %v840_v47  ;;  %v874_v47 = vld [vmem:[#allocation11 + $0x2d0] sm:$0xff] }
 0x4ce   :  { %3912 = vmatprep.subr.bf16.mxu0 %v4293_v1 }
 0x4d1   :  { %3913 = vmatpush3.bf16.msra.mxu0 %v3975_v51  ;;  %v3446_v51 = vcombine.low %v833_v39, %v841_v49 }
 0x4d2   :  { %3914 = vmatprep.subr.bf16.mxu0 %v4293_v1 }
 0x4d5   :  { %3915 = vmatpush3.bf16.msra.mxu0 %v3976_v52  ;;  %v3447_v52 = vcombine.high %v833_v39, %v841_v49  ;;  %v867_v39 = vld [vmem:[#allocation11 + $0x298] sm:$0xff] }
 0x4d6   :  { %1595 = vmatprep.subr.bf16.mxu0 %v3511_v12 }
 0x533   :  { %v566_v37 = vpop.xlane.xlu0 %565 }
 0x534   :  { %4117 = vrcp.f32 %v566_v37  ;;  %v848_v37 = vld [vmem:[#allocation11 + $0x200] sm:$0xff] }
 0x537   :  { %v569_v38 = vpop.xlane.xlu1 %568  ;;  %v577_v40 = vpop.permute.xlu0 %576 }
 0x538   :  { %4119 = vrcp.f32 %v569_v38  ;;  %3895 = vmatpush3.bf16.msra.mxu1 %v577_v40  ;;  %v856_v38 = vld [vmem:[#allocation11 + $0x240] sm:$0xff]  ;;  %v849_v40 = vld [vmem:[#allocation11 + $0x208] sm:$0xff] }
 0x539   :  { %1552 = vmatprep.subr.bf16.mxu1 %v3509_v9  ;;  %v3397_v9 = vcombine.high %v784_v6, %v792_v7 }
 0x541   :  { %v4118_v41 = vpop.eup %4117 }
 0x542   :  { %v572_v43 = vmul.f32 %v4118_v41, %v4114_v33  ;;  %v873_v33 = vld [vmem:[#allocation11 + $0x2c8] sm:$0xff]  ;;  %v3461_v41 = vcombine.high %v848_v37, %v856_v38 }
 0x543   :  { %v3479_v36 = vcombine.high %v865_v31, %v873_v33 }
 0x545   :  { %v4120_v42 = vpop.eup %4119 }
 0x546   :  { %v573_v44 = vmul.f32 %v4120_v42, %v4116_v35  ;;  %v3478_v35 = vcombine.low %v865_v31, %v873_v33  ;;  %v857_v42 = vld [vmem:[#allocation11 + $0x248] sm:$0xff] }
 0x548   :  { %v574_v45 = vpack.c.bf16 %v573_v44, %v572_v43  ;;  %v3460_v43 = vcombine.low %v848_v37, %v856_v38  ;;  %v3462_v44 = vcombine.low %v849_v40, %v857_v42  ;;  %v882_v38 = vld [vmem:[#allocation11 + $0x310] sm:$0xff] }
 0x54a   :  { %3897 = vmatmul.mubr.msk.bf16.vlgmr.msra.gmra.mxu1 %vm425_vm3, %v574_v45  ;;  %v3463_v45 = vcombine.high %v849_v40, %v857_v42  ;;  %v890_v40 = vld [vmem:[#allocation11 + $0x350] sm:$0xff]  ;;  %v891_v42 = vld [vmem:[#allocation11 + $0x358] sm:$0xff] }
 0x54b   :  { %1584 = vmatprep.mubr.bf16.mxu1 %v4292_v0  ;;  %1553 = vmatpush1.bf16.msra.mxu1 %v3508_v8  ;;  %v785_v8 = vld [vmem:[#allocation11 + $0x8] sm:$0xff]  ;;  %v3496_v49 = vcombine.low %v882_v38, %v890_v40 }
 0x54c   :  { %1554 = vmatprep.subr.bf16.mxu1 %v3493_v22  ;;  %v3398_v12 = vcombine.low %v785_v8, %v793_v10 }
 0x54f   :  { %1555 = vmatpush1.bf16.msra.mxu1 %v3492_v26 }
 0x550   :  { %1556 = vmatprep.subr.bf16.mxu1 %v3477_v32  ;;  %v3394_v32 = vld [vmem:[%s4510_s4] ss:$0 sm:$0xff] }
 0x553   :  { %1557 = vmatpush1.bf16.msra.mxu1 %v3476_v34 }
 0x554   :  { %1558 = vmatprep.subr.bf16.mxu1 %v3461_v41  ;;  %v883_v41 = vld [vmem:[#allocation11 + $0x318] sm:$0xff] }
 0x555   :  { %v3499_v46 = vcombine.high %v883_v41, %v891_v42 }
 0x557   :  { %1559 = vmatpush1.bf16.msra.mxu1 %v3460_v43 }
 0x558   :  { %1560 = vmatprep.subr.bf16.mxu1 %v3445_v48  ;;  %v875_v48 = vld [vmem:[#allocation11 + $0x2d8] sm:$0xff] }
 0x55b   :  { %1561 = vmatpush1.bf16.msra.mxu1 %v3444_v50  ;;  %v3498_v50 = vcombine.low %v883_v41, %v891_v42  ;;  %v884_v41 = vld [vmem:[#allocation11 + $0x320] sm:$0xff] }
 0x55c   :  { %v892_v42 = vld [vmem:[#allocation11 + $0x360] sm:$0xff] }
 0x60a   :  { %v616_v53 = vpop.f32.mrf.mxu1 }
 0x60b   :  { %625 = vrot.lane.b32.xlu1 %v616_v53, %s4283_s23  ;;  %v816_v53 = vld [vmem:[#allocation11 + $0x100] sm:$0xff] }
 0x60c   :  { %v3898_v54 = vpop.f32.mrf.mxu1 }
 0x60d   :  { %v824_v54 = vld [vmem:[#allocation11 + $0x140] sm:$0xff] }
 0x60e   :  { %v619_v55 = vpop.f32.mrf.mxu1 }
 0x60f   :  { %627 = vrot.lane.b32.xlu1 %v619_v55, %s4283_s23  ;;  %v817_v55 = vld [vmem:[#allocation11 + $0x108] sm:$0xff] }
 0x610   :  { %v3899_v56 = vpop.f32.mrf.mxu1 }
 0x611   :  { %v3429_v56 = vcombine.high %v816_v53, %v824_v54 }
 0x613   :  { %1562 = vmatprep.subr.bf16.mxu1 %v3429_v56  ;;  %v859_v56 = vld [vmem:[#allocation11 + $0x258] sm:$0xff] }
 0x67d   :  { %v626_v57 = vpop.permute.xlu1 %625 }
 0x67e   :  { %632 = vst.msk [vmem:[#allocation2] sm:$0xff] %vm631_vm5, %v626_v57  ;;  %v825_v57 = vld [vmem:[#allocation11 + $0x148] sm:$0xff] }
 0x681   :  { %v628_v58 = vpop.permute.xlu1 %627 }
 0x682   :  { %633 = vst.msk [vmem:[#allocation2 + $0x8] sm:$0xff] %vm631_vm5, %v628_v58  ;;  %v3428_v58 = vcombine.low %v816_v53, %v824_v54  ;;  %v850_v53 = vld [vmem:[#allocation11 + $0x210] sm:$0xff] }
 0x683   :  { %v858_v54 = vld [vmem:[#allocation11 + $0x250] sm:$0xff] }
 0x684   :  { %1563 = vmatpush1.bf16.msra.mxu1 %v3428_v58  ;;  %v3482_v58 = vcombine.low %v867_v39, %v875_v48 }
 0x685   :  { %v634_v59 = vld [vmem:[#allocation2] sm:$0xff] }
 0x689   :  { %v635_v60 = vld [vmem:[#allocation2 + $0x8] sm:$0xff] }
 0x68a   :  { %v636_v61 = vpack.c.bf16 %v635_v60, %v634_v59  ;;  %v3430_v59 = vcombine.low %v817_v55, %v825_v57  ;;  %v3431_v60 = vcombine.high %v817_v55, %v825_v57  ;;  %v851_v55 = vld [vmem:[#allocation11 + $0x218] sm:$0xff] }
 0x68c   :  { %3917 = vmatmul.mubr.bf16.vlgmr.msra.gmra.mxu0 %v636_v61  ;;  %v800_v61 = vld [vmem:[#allocation11 + $0x80] sm:$0xff] }
 0x68d   :  { %1627 = vmatprep.mubr.bf16.mxu0 %v4292_v0  ;;  %1596 = vmatpush1.bf16.msra.mxu0 %v3510_v11  ;;  %v3396_v11 = vcombine.low %v784_v6, %v792_v7  ;;  %v818_v6 = vld [vmem:[#allocation11 + $0x110] sm:$0xff] }
 0x68e   :  { %1597 = vmatprep.subr.bf16.mxu0 %v3495_v28  ;;  %v826_v7 = vld [vmem:[#allocation11 + $0x150] sm:$0xff] }
 0x691   :  { %1598 = vmatpush1.bf16.msra.mxu0 %v3494_v27 }
 0x692   :  { %1599 = vmatprep.subr.bf16.mxu0 %v3479_v36  ;;  %v3395_v36 = vld [vmem:[%s4511_s5] ss:$0 sm:$0xff] }
 0x695   :  { %1600 = vmatpush1.bf16.msra.mxu0 %v3478_v35 }
 0x696   :  { %1601 = vmatprep.subr.bf16.mxu0 %v3463_v45  ;;  %v3497_v45 = vcombine.high %v882_v38, %v890_v40 }
 0x699   :  { %1602 = vmatpush1.bf16.msra.mxu0 %v3462_v44 }
 0x69a   :  { %1603 = vmatprep.subr.bf16.mxu0 %v3447_v52  ;;  %v3483_v52 = vcombine.high %v867_v39, %v875_v48  ;;  %v3501_v39 = vcombine.high %v884_v41, %v892_v42 }
 0x69d   :  { %1604 = vmatpush1.bf16.msra.mxu0 %v3446_v51 }
 0x69e   :  { %1605 = vmatprep.subr.bf16.mxu0 %v3431_v60  ;;  %v3467_v60 = vcombine.high %v851_v55, %v859_v56 }
 0x6a1   :  { %1606 = vmatpush1.bf16.msra.mxu0 %v3430_v59  ;;  %v3465_v59 = vcombine.high %v850_v53, %v858_v54 }
 0x74c   :  { %v735_v1 = vpop.f32.mrf.mxu0 }
 0x74d   :  { %v736_v62 = vadd.f32 %v735_v1, %v4387_v23  ;;  %v808_v1 = vld [vmem:[#allocation11 + $0xc0] sm:$0xff] }
 0x74e   :  { %v3918_v63 = vpop.f32.mrf.mxu0 }
 0x74f   :  { %744 = vadd.xlane.f32.xlu1 %v736_v62  ;;  %v3413_v63 = vcombine.high %v800_v61, %v808_v1 }
 0x750   :  { %v738_v2 = vpop.f32.mrf.mxu0 }
 0x751   :  { %v739_v3 = vadd.f32 %v738_v2, %v4389_v24  ;;  %v809_v2 = vld [vmem:[#allocation11 + $0xc8] sm:$0xff]  ;;  %1564 = vmatprep.subr.bf16.mxu1 %v3413_v63  ;;  %v843_v63 = vld [vmem:[#allocation11 + $0x1d8] sm:$0xff] }
 0x752   :  { %v3919_v4 = vpop.f32.mrf.mxu0 }
 0x753   :  { %746 = vadd.xlane.f32.xlu0 %v739_v3 }
 0x7d8   :  { %v745_v23 = vpop.xlane.xlu1 %744 }
 0x7d9   :  { %v749_v13 = vmul.f32 0.0078125, %v745_v23  ;;  %v3399_v23 = vcombine.high %v785_v8, %v793_v10  ;;  %v819_v8 = vld [vmem:[#allocation11 + $0x118] sm:$0xff] }
 0x7db   :  { %v4454_v14 = vsub.f32 %v736_v62, %v749_v13  ;;  %v801_v62 = vld [vmem:[#allocation11 + $0x88] sm:$0xff]  ;;  %v898_v13 = vld [vmem:[#allocation11 + $0x390] sm:$0xff] }
 0x7dc   :  { %v747_v15 = vpop.xlane.xlu0 %746  ;;  %v3414_v4 = vcombine.low %v801_v62, %v809_v2  ;;  %v3415_v5 = vcombine.high %v801_v62, %v809_v2  ;;  %v835_v62 = vld [vmem:[#allocation11 + $0x198] sm:$0xff]  ;;  %v3464_v2 = vcombine.low %v850_v53, %v858_v54  ;;  %v3500_v53 = vcombine.low %v884_v41, %v892_v42 }
 0x7dd   :  { %v750_v24 = vmul.f32 0.0078125, %v747_v15  ;;  %v753_v16 = vmul.f32 %v4454_v14, %v4454_v14  ;;  %v906_v15 = vld [vmem:[#allocation11 + $0x3d0] sm:$0xff] }
 0x7de   :  { %1607 = vmatprep.subr.bf16.mxu0 %v3415_v5  ;;  %v3451_v5 = vcombine.high %v835_v62, %v843_v63 }
 0x7df   :  { %v4458_v17 = vsub.f32 %v739_v3, %v750_v24  ;;  %755 = vadd.xlane.f32.xlu0 %v753_v16  ;;  %v3412_v3 = vcombine.low %v800_v61, %v808_v1  ;;  %1608 = vmatpush1.bf16.msra.mxu0 %v3414_v4  ;;  %v899_v24 = vld [vmem:[#allocation11 + $0x398] sm:$0xff]  ;;  %v3512_v16 = vcombine.low %v898_v13, %v906_v15  ;;  %v834_v61 = vld [vmem:[#allocation11 + $0x190] sm:$0xff] }
 0x7e0   :  { %1609 = vmatprep.subr.bf16.mxu0 %v3399_v23  ;;  %v3514_v20 = vcombine.low %v899_v24, %v907_v19  ;;  %v3515_v21 = vcombine.high %v899_v24, %v907_v19  ;;  %v842_v1 = vld [vmem:[#allocation11 + $0x1d0] sm:$0xff]  ;;  %v803_v24 = vld [vmem:[#allocation11 + $0x98] sm:$0xff] }
 0x7e1   :  { %v754_v18 = vmul.f32 %v4458_v17, %v4458_v17  ;;  %1565 = vmatpush1.bf16.msra.mxu1 %v3412_v3  ;;  %v3466_v3 = vcombine.low %v851_v55, %v859_v56  ;;  %v3449_v4 = vcombine.high %v834_v61, %v842_v1  ;;  %v3448_v10 = vcombine.low %v834_v61, %v842_v1 }
 0x7e2   :  { %1566 = vmatprep.subr.bf16.mxu1 %v3397_v9  ;;  %v827_v9 = vld [vmem:[#allocation11 + $0x158] sm:$0xff] }
 0x7e3   :  { %757 = vadd.xlane.f32.xlu0 %v754_v18  ;;  %1610 = vmatpush1.bf16.msra.mxu0 %v3398_v12  ;;  %v3513_v18 = vcombine.high %v898_v13, %v906_v15  ;;  %v3433_v12 = vcombine.high %v818_v6, %v826_v7  ;;  %v3435_v23 = vcombine.high %v819_v8, %v827_v9  ;;  %v802_v13 = vld [vmem:[#allocation11 + $0x90] sm:$0xff] }
 0x7e4   :  { %1681 = vmatprep.subr.bf16.mxu0 %v3515_v21  ;;  %v810_v15 = vld [vmem:[#allocation11 + $0xd0] sm:$0xff]  ;;  %v3434_v19 = vcombine.low %v819_v8, %v827_v9 }
 0x7e5   :  { %1567 = vmatpush1.bf16.msra.mxu1 %v3396_v11  ;;  %v3450_v11 = vcombine.low %v835_v62, %v843_v63 }
 0x7e6   :  { %1638 = vmatprep.subr.bf16.mxu1 %v3513_v18  ;;  %v3432_v18 = vcombine.low %v818_v6, %v826_v7 }
 0x868   :  { %v756_v22 = vpop.xlane.xlu0 %755 }
 0x869   :  { %v759_v25 = vmul.f32 0.0078125, %v756_v22  ;;  %v786_v22 = vld [vmem:[#allocation11 + $0x10] sm:$0xff] }
 0x86b   :  { %v761_v26 = vadd.f32 1e-05, %v759_v25  ;;  %v794_v25 = vld [vmem:[#allocation11 + $0x50] sm:$0xff] }
 0x86c   :  { %v758_v27 = vpop.xlane.xlu0 %757 }
 0x86d   :  { %4121 = vrsqrt.f32 %v761_v26  ;;  %v760_v28 = vmul.f32 0.0078125, %v758_v27  ;;  %v787_v26 = vld [vmem:[#allocation11 + $0x18] sm:$0xff] }
 0x86e   :  { %v795_v27 = vld [vmem:[#allocation11 + $0x58] sm:$0xff] }
 0x86f   :  { %v762_v29 = vadd.f32 1e-05, %v760_v28  ;;  %v3416_v28 = vcombine.low %v802_v13, %v810_v15 }
 0x871   :  { %4123 = vrsqrt.f32 %v762_v29 }
 0x87a   :  { %v4122_v30 = vpop.eup %4121 }
 0x87b   :  { %v765_v31 = vmul.f32 %v4122_v30, %v4454_v14  ;;  %v3401_v30 = vcombine.high %v786_v22, %v794_v25 }
 0x87d   :  { %v773_v34 = vmul.f32 %v3394_v32, %v765_v31  ;;  %v3403_v31 = vcombine.high %v787_v26, %v795_v27 }
 0x87e   :  { %v4124_v33 = vpop.eup %4123 }
 0x87f   :  { %v766_v35 = vmul.f32 %v4124_v33, %v4458_v17  ;;  %v4470_v43 = vadd.f32 %v3395_v36, %v773_v34  ;;  %v866_v17 = vld [vmem:[#allocation11 + $0x290] sm:$0xff]  ;;  %v908_v33 = vld [vmem:[#allocation11 + $0x3e0] sm:$0xff]  ;;  %v901_v34 = vld [vmem:[#allocation11 + $0x3a8] sm:$0xff] }
 0x880   :  { %v3481_v51 = vcombine.high %v866_v17, %v874_v47  ;;  %v3480_v57 = vcombine.low %v866_v17, %v874_v47 }
 0x881   :  { %v774_v37 = vmul.f32 %v3394_v32, %v766_v35  ;;  %v900_v32 = vld [vmem:[#allocation11 + $0x3a0] sm:$0xff]  ;;  %v909_v35 = vld [vmem:[#allocation11 + $0x3e8] sm:$0xff] }
 0x882   :  { %v3517_v38 = vcombine.high %v900_v32, %v908_v33  ;;  %v3519_v40 = vcombine.high %v901_v34, %v909_v35  ;;  %v3516_v17 = vcombine.low %v900_v32, %v908_v33  ;;  %v3518_v47 = vcombine.low %v901_v34, %v909_v35 }
 0x883   :  { %v4472_v14 = vadd.f32 %v3395_v36, %v774_v37  ;;  %v3400_v36 = vcombine.low %v786_v22, %v794_v25  ;;  %v3402_v37 = vcombine.low %v787_v26, %v795_v27 }
 0x885   :  { %v4476_v44 = vpack.c.bf16 %v4472_v14, %v4470_v43 }
 0x887   :  { %1585 = vmatmul.mubr.bf16.vlgmr.msra.gmra.mxu1 %v4476_v44  ;;  %1628 = vmatmul.mubr.bf16.vlgmr.msra.gmra.mxu0 %v4476_v44 }
 0x888   :  { %1639 = vmatpush1.bf16.msra.mxu1 %v3512_v16  ;;  %1682 = vmatpush1.bf16.msra.mxu0 %v3514_v20  ;;  %v811_v16 = vld [vmem:[#allocation11 + $0xd8] sm:$0xff]  ;;  %v3417_v20 = vcombine.high %v802_v13, %v810_v15 }
 0x889   :  { %1640 = vmatprep.subr.bf16.mxu1 %v3497_v45  ;;  %1683 = vmatprep.subr.bf16.mxu0 %v3499_v46  ;;  %v3419_v21 = vcombine.high %v803_v24, %v811_v16  ;;  %v3418_v29 = vcombine.low %v803_v24, %v811_v16  ;;  %v885_v45 = vld [vmem:[#allocation11 + $0x328] sm:$0xff] }
 0x88a   :  { %1670 = vmatprep.mubr.bf16.mxu1 %v4292_v0  ;;  %1713 = vmatprep.mubr.bf16.mxu0 %v4292_v0  ;;  %v893_v46 = vld [vmem:[#allocation11 + $0x368] sm:$0xff] }
 0x88b   :  { %v3503_v48 = vcombine.high %v885_v45, %v893_v46  ;;  %v3502_v54 = vcombine.low %v885_v45, %v893_v46 }
 0x88c   :  { %1641 = vmatpush1.bf16.msra.mxu1 %v3496_v49  ;;  %1684 = vmatpush1.bf16.msra.mxu0 %v3498_v50  ;;  %v868_v49 = vld [vmem:[#allocation11 + $0x2a0] sm:$0xff] }
 0x88d   :  { %1642 = vmatprep.subr.bf16.mxu1 %v3481_v51  ;;  %1685 = vmatprep.subr.bf16.mxu0 %v3483_v52  ;;  %v876_v50 = vld [vmem:[#allocation11 + $0x2e0] sm:$0xff]  ;;  %v869_v51 = vld [vmem:[#allocation11 + $0x2a8] sm:$0xff] }
 0x88e   :  { %v877_v52 = vld [vmem:[#allocation11 + $0x2e8] sm:$0xff]  ;;  %v3485_v55 = vcombine.high %v868_v49, %v876_v50  ;;  %v3484_v61 = vcombine.low %v868_v49, %v876_v50 }
 0x88f   :  { %v3487_v56 = vcombine.high %v869_v51, %v877_v52  ;;  %v3486_v1 = vcombine.low %v869_v51, %v877_v52 }
 0x890   :  { %1643 = vmatpush1.bf16.msra.mxu1 %v3480_v57  ;;  %1686 = vmatpush1.bf16.msra.mxu0 %v3482_v58  ;;  %v852_v57 = vld [vmem:[#allocation11 + $0x220] sm:$0xff] }
 0x891   :  { %1644 = vmatprep.subr.bf16.mxu1 %v3465_v59  ;;  %1687 = vmatprep.subr.bf16.mxu0 %v3467_v60  ;;  %v860_v58 = vld [vmem:[#allocation11 + $0x260] sm:$0xff]  ;;  %v853_v59 = vld [vmem:[#allocation11 + $0x228] sm:$0xff] }
 0x892   :  { %v861_v60 = vld [vmem:[#allocation11 + $0x268] sm:$0xff]  ;;  %v3469_v62 = vcombine.high %v852_v57, %v860_v58  ;;  %v3468_v6 = vcombine.low %v852_v57, %v860_v58 }
 0x893   :  { %v3471_v63 = vcombine.high %v853_v59, %v861_v60  ;;  %v3470_v7 = vcombine.low %v853_v59, %v861_v60 }
 0x894   :  { %1645 = vmatpush1.bf16.msra.mxu1 %v3464_v2  ;;  %1688 = vmatpush1.bf16.msra.mxu0 %v3466_v3  ;;  %v836_v2 = vld [vmem:[#allocation11 + $0x1a0] sm:$0xff] }
 0x895   :  { %1646 = vmatprep.subr.bf16.mxu1 %v3449_v4  ;;  %1689 = vmatprep.subr.bf16.mxu0 %v3451_v5  ;;  %v844_v3 = vld [vmem:[#allocation11 + $0x1e0] sm:$0xff]  ;;  %v837_v4 = vld [vmem:[#allocation11 + $0x1a8] sm:$0xff] }
 0x896   :  { %v845_v5 = vld [vmem:[#allocation11 + $0x1e8] sm:$0xff]  ;;  %v3453_v8 = vcombine.high %v836_v2, %v844_v3  ;;  %v3452_v13 = vcombine.low %v836_v2, %v844_v3 }
 0x897   :  { %v3455_v9 = vcombine.high %v837_v4, %v845_v5  ;;  %v3454_v15 = vcombine.low %v837_v4, %v845_v5 }
 0x898   :  { %1647 = vmatpush1.bf16.msra.mxu1 %v3448_v10  ;;  %1690 = vmatpush1.bf16.msra.mxu0 %v3450_v11  ;;  %v820_v10 = vld [vmem:[#allocation11 + $0x120] sm:$0xff] }
 0x899   :  { %1648 = vmatprep.subr.bf16.mxu1 %v3433_v12  ;;  %1691 = vmatprep.subr.bf16.mxu0 %v3435_v23  ;;  %v828_v11 = vld [vmem:[#allocation11 + $0x160] sm:$0xff]  ;;  %v821_v12 = vld [vmem:[#allocation11 + $0x128] sm:$0xff] }
 0x89a   :  { %v829_v23 = vld [vmem:[#allocation11 + $0x168] sm:$0xff]  ;;  %v3437_v24 = vcombine.high %v820_v10, %v828_v11  ;;  %v3436_v22 = vcombine.low %v820_v10, %v828_v11 }
 0x89b   :  { %v3439_v16 = vcombine.high %v821_v12, %v829_v23  ;;  %v3438_v25 = vcombine.low %v821_v12, %v829_v23  ;;  %v822_v23 = vld [vmem:[#allocation11 + $0x130] sm:$0xff] }
 0x89c   :  { %1649 = vmatpush1.bf16.msra.mxu1 %v3432_v18  ;;  %1692 = vmatpush1.bf16.msra.mxu0 %v3434_v19  ;;  %v804_v18 = vld [vmem:[#allocation11 + $0xa0] sm:$0xff] }
 0x89d   :  { %1650 = vmatprep.subr.bf16.mxu1 %v3417_v20  ;;  %1693 = vmatprep.subr.bf16.mxu0 %v3419_v21  ;;  %v812_v19 = vld [vmem:[#allocation11 + $0xe0] sm:$0xff]  ;;  %v805_v20 = vld [vmem:[#allocation11 + $0xa8] sm:$0xff] }
 0x89e   :  { %v813_v21 = vld [vmem:[#allocation11 + $0xe8] sm:$0xff]  ;;  %v3421_v26 = vcombine.high %v804_v18, %v812_v19  ;;  %v3420_v32 = vcombine.low %v804_v18, %v812_v19 }
 0x89f   :  { %v3423_v27 = vcombine.high %v805_v20, %v813_v21  ;;  %v3422_v33 = vcombine.low %v805_v20, %v813_v21  ;;  %v806_v21 = vld [vmem:[#allocation11 + $0xb0] sm:$0xff] }
 0x8a0   :  { %1651 = vmatpush1.bf16.msra.mxu1 %v3416_v28  ;;  %1694 = vmatpush1.bf16.msra.mxu0 %v3418_v29  ;;  %v788_v28 = vld [vmem:[#allocation11 + $0x20] sm:$0xff] }
 0x8a1   :  { %1652 = vmatprep.subr.bf16.mxu1 %v3401_v30  ;;  %1695 = vmatprep.subr.bf16.mxu0 %v3403_v31  ;;  %v796_v29 = vld [vmem:[#allocation11 + $0x60] sm:$0xff]  ;;  %v789_v30 = vld [vmem:[#allocation11 + $0x28] sm:$0xff] }
 0x8a2   :  { %v797_v31 = vld [vmem:[#allocation11 + $0x68] sm:$0xff]  ;;  %v3405_v34 = vcombine.high %v788_v28, %v796_v29  ;;  %v3404_v41 = vcombine.low %v788_v28, %v796_v29 }
 0x8a3   :  { %v3407_v35 = vcombine.high %v789_v30, %v797_v31  ;;  %v3406_v42 = vcombine.low %v789_v30, %v797_v31  ;;  %v790_v31 = vld [vmem:[#allocation11 + $0x30] sm:$0xff] }
 0x8a4   :  { %1653 = vmatpush1.bf16.msra.mxu1 %v3400_v36  ;;  %1696 = vmatpush1.bf16.msra.mxu0 %v3402_v37  ;;  %v902_v36 = vld [vmem:[#allocation11 + $0x3b0] sm:$0xff] }
 0x8a5   :  { %1724 = vmatprep.subr.bf16.mxu1 %v3517_v38  ;;  %1767 = vmatprep.subr.bf16.mxu0 %v3519_v40  ;;  %v910_v37 = vld [vmem:[#allocation11 + $0x3f0] sm:$0xff]  ;;  %v903_v38 = vld [vmem:[#allocation11 + $0x3b8] sm:$0xff] }
 0x8a6   :  { %v911_v40 = vld [vmem:[#allocation11 + $0x3f8] sm:$0xff]  ;;  %v3521_v45 = vcombine.high %v902_v36, %v910_v37  ;;  %v3520_v49 = vcombine.low %v902_v36, %v910_v37 }
 0x8a7   :  { %1671 = vmatmul.mubr.bf16.vlgmr.msra.gmra.mxu1 %v4476_v44  ;;  %1714 = vmatmul.mubr.bf16.vlgmr.msra.gmra.mxu0 %v4476_v44  ;;  %v3523_v46 = vcombine.high %v903_v38, %v911_v40  ;;  %v3522_v50 = vcombine.low %v903_v38, %v911_v40 }
 0x8a8   :  { %1725 = vmatpush1.bf16.msra.mxu1 %v3516_v17  ;;  %1768 = vmatpush1.bf16.msra.mxu0 %v3518_v47  ;;  %v886_v17 = vld [vmem:[#allocation11 + $0x330] sm:$0xff] }
 0x8a9   :  { %1726 = vmatprep.subr.bf16.mxu1 %v3501_v39  ;;  %1769 = vmatprep.subr.bf16.mxu0 %v3503_v48  ;;  %v894_v47 = vld [vmem:[#allocation11 + $0x370] sm:$0xff]  ;;  %v887_v39 = vld [vmem:[#allocation11 + $0x338] sm:$0xff] }
 0x8aa   :  { %1756 = vmatprep.mubr.bf16.mxu1 %v4292_v0  ;;  %1799 = vmatprep.mubr.bf16.mxu0 %v4292_v0  ;;  %v895_v48 = vld [vmem:[#allocation11 + $0x378] sm:$0xff]  ;;  %v3505_v51 = vcombine.high %v886_v17, %v894_v47  ;;  %v3504_v57 = vcombine.low %v886_v17, %v894_v47  ;;  %v3981_v47 = vld [vmem:[#allocation12 + $0x70] sm:$0xff]  }
 0x8ab   :  { %v3507_v52 = vcombine.high %v887_v39, %v895_v48  ;;  %v3506_v58 = vcombine.low %v887_v39, %v895_v48  ;;  %v3980_v17 = vld [vmem:[#allocation12 + $0xb8] sm:$0xff]   ;;  %v3982_v39 = vld [vmem:[#allocation12 + $0xf0] sm:$0xff]  }
 0x8ac   :  { %1727 = vmatpush1.bf16.msra.mxu1 %v3500_v53  ;;  %1770 = vmatpush1.bf16.msra.mxu0 %v3502_v54  ;;  %v870_v53 = vld [vmem:[#allocation11 + $0x2b0] sm:$0xff] }
 0x8ad   :  { %1728 = vmatprep.subr.bf16.mxu1 %v3485_v55  ;;  %1771 = vmatprep.subr.bf16.mxu0 %v3487_v56  ;;  %v878_v54 = vld [vmem:[#allocation11 + $0x2f0] sm:$0xff]  ;;  %v871_v55 = vld [vmem:[#allocation11 + $0x2b8] sm:$0xff] }
 0x8ae   :  { %v879_v56 = vld [vmem:[#allocation11 + $0x2f8] sm:$0xff]  ;;  %v3489_v59 = vcombine.high %v870_v53, %v878_v54  ;;  %v3488_v2 = vcombine.low %v870_v53, %v878_v54  ;;  %v3983_v48 = vld [vmem:[#allocation12 + $0x30] sm:$0xff]   ;;  %v3988_v53 = vld [vmem:[#allocation12 + $0xa8] sm:$0xff]  }
 0x8af   :  { %v3491_v60 = vcombine.high %v871_v55, %v879_v56  ;;  %v3490_v3 = vcombine.low %v871_v55, %v879_v56  ;;  %v3989_v54 = vld [vmem:[#allocation12 + $0x60] sm:$0xff]  }
 0x8b0   :  { %1729 = vmatpush1.bf16.msra.mxu1 %v3484_v61  ;;  %1772 = vmatpush1.bf16.msra.mxu0 %v3486_v1  ;;  %v854_v61 = vld [vmem:[#allocation11 + $0x230] sm:$0xff]  ;;  %v3990_v55 = vld [vmem:[#allocation12 + $0xe0] sm:$0xff]  }
 0x8b1   :  { %1730 = vmatprep.subr.bf16.mxu1 %v3469_v62  ;;  %1773 = vmatprep.subr.bf16.mxu0 %v3471_v63  ;;  %v862_v1 = vld [vmem:[#allocation11 + $0x270] sm:$0xff]  ;;  %v855_v62 = vld [vmem:[#allocation11 + $0x238] sm:$0xff]  ;;  %v3991_v56 = vld [vmem:[#allocation12 + $0x20] sm:$0xff]  }
 0x8b2   :  { %v863_v63 = vld [vmem:[#allocation11 + $0x278] sm:$0xff]  ;;  %v3473_v4 = vcombine.high %v854_v61, %v862_v1  ;;  %v3472_v10 = vcombine.low %v854_v61, %v862_v1  ;;  %v3997_v61 = vld [vmem:[#allocation12 + $0x50] sm:$0xff]  }
 0x8b3   :  { %v3475_v5 = vcombine.high %v855_v62, %v863_v63  ;;  %v3474_v11 = vcombine.low %v855_v62, %v863_v63  ;;  %v3998_v1 = vld [vmem:[#allocation12 + $0xd0] sm:$0xff]  }
 0x8b4   :  { %1731 = vmatpush1.bf16.msra.mxu1 %v3468_v6  ;;  %1774 = vmatpush1.bf16.msra.mxu0 %v3470_v7  ;;  %v838_v6 = vld [vmem:[#allocation11 + $0x1b0] sm:$0xff] }
 0x8b5   :  { %1732 = vmatprep.subr.bf16.mxu1 %v3453_v8  ;;  %1775 = vmatprep.subr.bf16.mxu0 %v3455_v9  ;;  %v846_v7 = vld [vmem:[#allocation11 + $0x1f0] sm:$0xff]  ;;  %v839_v8 = vld [vmem:[#allocation11 + $0x1b8] sm:$0xff] }
 0x8b6   :  { %v847_v9 = vld [vmem:[#allocation11 + $0x1f8] sm:$0xff]  ;;  %v3457_v12 = vcombine.high %v838_v6, %v846_v7  ;;  %v3999_v62 = vld [vmem:[#allocation12 + $0x10] sm:$0xff]  }
 0x8b7   :  { %v3458_v18 = vcombine.low %v839_v8, %v847_v9  ;;  %v4000_v63 = vld [vmem:[#allocation12 + $0x90] sm:$0xff]  }
 0x8b8   :  { %1733 = vmatpush1.bf16.msra.mxu1 %v3452_v13  ;;  %1776 = vmatpush1.bf16.msra.mxu0 %v3454_v15  ;;  %v830_v13 = vld [vmem:[#allocation11 + $0x170] sm:$0xff]  ;;  %v823_v15 = vld [vmem:[#allocation11 + $0x138] sm:$0xff] }
 0x8b9   :  { %1734 = vmatprep.subr.bf16.mxu1 %v3437_v24  ;;  %1777 = vmatprep.subr.bf16.mxu0 %v3439_v16  ;;  %v831_v24 = vld [vmem:[#allocation11 + $0x178] sm:$0xff]  ;;  %v3456_v16 = vcombine.low %v838_v6, %v846_v7  ;;  %v3441_v19 = vcombine.high %v822_v23, %v830_v13  ;;  %v4005_v6 = vld [vmem:[#allocation12 + $0x40] sm:$0xff]  }
 0x8ba   :  { %v3443_v20 = vcombine.high %v823_v15, %v831_v24  ;;  %v3442_v28 = vcombine.low %v823_v15, %v831_v24  ;;  %v4006_v7 = vld [vmem:[#allocation12 + $0xc0] sm:$0xff]  }
 0x8bc   :  { %1735 = vmatpush1.bf16.msra.mxu1 %v3436_v22  ;;  %1778 = vmatpush1.bf16.msra.mxu0 %v3438_v25  ;;  %v814_v22 = vld [vmem:[#allocation11 + $0xf0] sm:$0xff]  ;;  %v807_v25 = vld [vmem:[#allocation11 + $0xb8] sm:$0xff] }
 0x8bd   :  { %1736 = vmatprep.subr.bf16.mxu1 %v3421_v26  ;;  %1779 = vmatprep.subr.bf16.mxu0 %v3423_v27  ;;  %v815_v26 = vld [vmem:[#allocation11 + $0xf8] sm:$0xff]  ;;  %v3440_v27 = vcombine.low %v822_v23, %v830_v13  ;;  %v3425_v29 = vcombine.high %v806_v21, %v814_v22 }
 0x8be   :  { %v3427_v30 = vcombine.high %v807_v25, %v815_v26  ;;  %v3426_v36 = vcombine.low %v807_v25, %v815_v26 }
 0x8c0   :  { %1737 = vmatpush1.bf16.msra.mxu1 %v3420_v32  ;;  %1780 = vmatpush1.bf16.msra.mxu0 %v3422_v33  ;;  %v798_v32 = vld [vmem:[#allocation11 + $0x70] sm:$0xff]  ;;  %v791_v33 = vld [vmem:[#allocation11 + $0x38] sm:$0xff] }
 0x8c1   :  { %1738 = vmatprep.subr.bf16.mxu1 %v3405_v34  ;;  %1781 = vmatprep.subr.bf16.mxu0 %v3407_v35  ;;  %v799_v34 = vld [vmem:[#allocation11 + $0x78] sm:$0xff]  ;;  %v3424_v35 = vcombine.low %v806_v21, %v814_v22  ;;  %v3409_v37 = vcombine.high %v790_v31, %v798_v32  ;;  %v3408_v40 = vcombine.low %v790_v31, %v798_v32 }
 0x8c2   :  { %v3411_v38 = vcombine.high %v791_v33, %v799_v34  ;;  %v4011_v31 = vld [vmem:[#allocation12 + $0x138] sm:$0xff]  }
 0x8c3   :  { %v4012_v32 = vld [vmem:[#allocation12 + $0x1b8] sm:$0xff]  }
 0x8c4   :  { %1739 = vmatpush1.bf16.msra.mxu1 %v3404_v41  ;;  %1782 = vmatpush1.bf16.msra.mxu0 %v3406_v42  ;;  %v3410_v41 = vcombine.low %v791_v33, %v799_v34  ;;  %v3977_v42 = vld [vmem:[#allocation12 + $0x78] sm:$0xff]  }
 0x8c5   :  { %1810 = vmatprep.subr.bf16.mxu1 %v3521_v45  ;;  %1853 = vmatprep.subr.bf16.mxu0 %v3523_v46  ;;  %v3978_v45 = vld [vmem:[#allocation12 + $0xf8] sm:$0xff]  }
 0x8c6   :  { %v3979_v46 = vld [vmem:[#allocation12 + $0x38] sm:$0xff]  }
 0x8c7   :  { %1757 = vmatmul.mubr.bf16.vlgmr.msra.gmra.mxu1 %v4476_v44  ;;  %1800 = vmatmul.mubr.bf16.vlgmr.msra.gmra.mxu0 %v4476_v44 }
 0x8c8   :  { %1811 = vmatpush1.bf16.msra.mxu1 %v3520_v49  ;;  %1854 = vmatpush1.bf16.msra.mxu0 %v3522_v50  ;;  %v3984_v49 = vld [vmem:[#allocation12 + $0xb0] sm:$0xff]   ;;  %v3985_v50 = vld [vmem:[#allocation12 + $0x68] sm:$0xff]  }
 0x8c9   :  { %1812 = vmatprep.subr.bf16.mxu1 %v3505_v51  ;;  %1855 = vmatprep.subr.bf16.mxu0 %v3507_v52  ;;  %v3986_v51 = vld [vmem:[#allocation12 + $0xe8] sm:$0xff]  }
 0x8ca   :  { %1842 = vmatprep.mubr.bf16.mxu1 %v4292_v0  ;;  %1885 = vmatprep.mubr.bf16.mxu0 %v4292_v0  ;;  %v3459_v0 = vcombine.high %v839_v8, %v847_v9  ;;  %v3987_v52 = vld [vmem:[#allocation12 + $0x28] sm:$0xff]   ;;  %v4007_v8 = vld [vmem:[#allocation12] sm:$0xff]  }
 0x8cb   :  { %v4008_v9 = vld [vmem:[#allocation12 + $0x80] sm:$0xff]  }
 0x8cc   :  { %1813 = vmatpush1.bf16.msra.mxu1 %v3504_v57  ;;  %1856 = vmatpush1.bf16.msra.mxu0 %v3506_v58  ;;  %v3993_v57 = vld [vmem:[#allocation12 + $0x58] sm:$0xff]  }
 0x8cd   :  { %1814 = vmatprep.subr.bf16.mxu1 %v3489_v59  ;;  %1857 = vmatprep.subr.bf16.mxu0 %v3491_v60  ;;  %v3994_v58 = vld [vmem:[#allocation12 + $0xd8] sm:$0xff]  }
 0x8ce   :  { %v3995_v59 = vld [vmem:[#allocation12 + $0x18] sm:$0xff]  }
 0x8cf   :  { %v3996_v60 = vld [vmem:[#allocation12 + $0x98] sm:$0xff]  }
 0x8d0   :  { %1815 = vmatpush1.bf16.msra.mxu1 %v3488_v2  ;;  %1858 = vmatpush1.bf16.msra.mxu0 %v3490_v3  ;;  %v4001_v2 = vld [vmem:[#allocation12 + $0x48] sm:$0xff]  }
 0x8d1   :  { %1816 = vmatprep.subr.bf16.mxu1 %v3473_v4  ;;  %1859 = vmatprep.subr.bf16.mxu0 %v3475_v5  ;;  %v4002_v3 = vld [vmem:[#allocation12 + $0xc8] sm:$0xff]  }
 0x8d2   :  { %v4003_v4 = vld [vmem:[#allocation12 + $0x8] sm:$0xff]  }
 0x8d3   :  { %v4004_v5 = vld [vmem:[#allocation12 + $0x88] sm:$0xff]  }
 0x8d4   :  { %1817 = vmatpush1.bf16.msra.mxu1 %v3472_v10  ;;  %1860 = vmatpush1.bf16.msra.mxu0 %v3474_v11  ;;  %v4009_v10 = vld [vmem:[#allocation12 + $0x178] sm:$0xff]  }
 0x8d5   :  { %1818 = vmatprep.subr.bf16.mxu1 %v3457_v12  ;;  %1861 = vmatprep.subr.bf16.mxu0 %v3459_v0  ;;  %v4010_v11 = vld [vmem:[#allocation12 + $0x1f8] sm:$0xff]  }
 0x8d8   :  { %1819 = vmatpush1.bf16.msra.mxu1 %v3456_v16  ;;  %1862 = vmatpush1.bf16.msra.mxu0 %v3458_v18 }
 0x8d9   :  { %1820 = vmatprep.subr.bf16.mxu1 %v3441_v19  ;;  %1863 = vmatprep.subr.bf16.mxu0 %v3443_v20 }
 0x8dc   :  { %1821 = vmatpush1.bf16.msra.mxu1 %v3440_v27  ;;  %1864 = vmatpush1.bf16.msra.mxu0 %v3442_v28 }
 0x8dd   :  { %1822 = vmatprep.subr.bf16.mxu1 %v3425_v29  ;;  %1865 = vmatprep.subr.bf16.mxu0 %v3427_v30 }
 0x8e0   :  { %1823 = vmatpush1.bf16.msra.mxu1 %v3424_v35  ;;  %1866 = vmatpush1.bf16.msra.mxu0 %v3426_v36  ;;  %v4013_v35 = vld [vmem:[#allocation12 + $0x170] sm:$0xff]  }
 0x8e1   :  { %1824 = vmatprep.subr.bf16.mxu1 %v3409_v37  ;;  %1867 = vmatprep.subr.bf16.mxu0 %v3411_v38  ;;  %v4014_v36 = vld [vmem:[#allocation12 + $0x1f0] sm:$0xff]  }
 0x8e2   :  { %v4015_v37 = vld [vmem:[#allocation12 + $0x130] sm:$0xff]  }
 0x8e3   :  { %v4016_v38 = vld [vmem:[#allocation12 + $0x1b0] sm:$0xff]  }
 0x8e4   :  { %1825 = vmatpush1.bf16.msra.mxu1 %v3408_v40  ;;  %1868 = vmatpush1.bf16.msra.mxu0 %v3410_v41  ;;  %v4017_v40 = vld [vmem:[#allocation12 + $0x168] sm:$0xff]  }
 0x8e5   :  { %3680 = vmatprep.subr.bf16.mxu1 %v3977_v42  ;;  %3702 = vmatprep.subr.bf16.mxu0 %v3978_v45  ;;  %v4018_v41 = vld [vmem:[#allocation12 + $0x1e8] sm:$0xff]  }
 0x8e6   :  { %v4019_v42 = vld [vmem:[#allocation12 + $0x128] sm:$0xff]  }
 0x8e7   :  { %1843 = vmatmul.mubr.bf16.vlgmr.msra.gmra.mxu1 %v4476_v44  ;;  %1886 = vmatmul.mubr.bf16.vlgmr.msra.gmra.mxu0 %v4476_v44  ;;  %v3992_v44 = vld [vmem:[#allocation12 + $0xa0] sm:$0xff]   ;;  %v4020_v45 = vld [vmem:[#allocation12 + $0x1a8] sm:$0xff]  }
 0x8e8   :  { %3681 = vmatpush3.bf16.msra.mxu1 %v3979_v46  ;;  %3703 = vmatpush3.bf16.msra.mxu0 %v3980_v17  ;;  %v4021_v46 = vld [vmem:[#allocation12 + $0x160] sm:$0xff]  }
 0x8e9   :  { %3682 = vmatprep.subr.bf16.mxu1 %v3981_v47  ;;  %3704 = vmatprep.subr.bf16.mxu0 %v3982_v39  ;;  %v4022_v17 = vld [vmem:[#allocation12 + $0x1e0] sm:$0xff]  }
 0x8ea   :  { %v4023_v47 = vld [vmem:[#allocation12 + $0x120] sm:$0xff]  }
 0x8eb   :  { %v4024_v39 = vld [vmem:[#allocation12 + $0x1a0] sm:$0xff]  }
 0x8ec   :  { %3683 = vmatpush3.bf16.msra.mxu1 %v3983_v48  ;;  %3705 = vmatpush3.bf16.msra.mxu0 %v3984_v49  ;;  %v4025_v48 = vld [vmem:[#allocation12 + $0x158] sm:$0xff]  }
 0x8ed   :  { %3684 = vmatprep.subr.bf16.mxu1 %v3985_v50  ;;  %3706 = vmatprep.subr.bf16.mxu0 %v3986_v51  ;;  %v4026_v49 = vld [vmem:[#allocation12 + $0x1d8] sm:$0xff]  }
 0x8ee   :  { %v4027_v50 = vld [vmem:[#allocation12 + $0x118] sm:$0xff]  }
 0x8ef   :  { %v4028_v51 = vld [vmem:[#allocation12 + $0x198] sm:$0xff]  }
 0x8f0   :  { %3685 = vmatpush3.bf16.msra.mxu1 %v3987_v52  ;;  %3707 = vmatpush3.bf16.msra.mxu0 %v3988_v53  ;;  %v4029_v52 = vld [vmem:[#allocation12 + $0x150] sm:$0xff]  }
 0x8f1   :  { %3686 = vmatprep.subr.bf16.mxu1 %v3989_v54  ;;  %3708 = vmatprep.subr.bf16.mxu0 %v3990_v55  ;;  %v4030_v53 = vld [vmem:[#allocation12 + $0x1d0] sm:$0xff]  }
 0x8f2   :  { %v4031_v54 = vld [vmem:[#allocation12 + $0x110] sm:$0xff]  }
 0x8f3   :  { %v4032_v55 = vld [vmem:[#allocation12 + $0x190] sm:$0xff]  }
 0x8f4   :  { %3687 = vmatpush3.bf16.msra.mxu1 %v3991_v56  ;;  %3709 = vmatpush3.bf16.msra.mxu0 %v3992_v44  ;;  %v4033_v56 = vld [vmem:[#allocation12 + $0x148] sm:$0xff]  }
 0x8f5   :  { %3688 = vmatprep.subr.bf16.mxu1 %v3993_v57  ;;  %3710 = vmatprep.subr.bf16.mxu0 %v3994_v58  ;;  %v4034_v44 = vld [vmem:[#allocation12 + $0x1c8] sm:$0xff]  }
 0x8f8   :  { %3689 = vmatpush3.bf16.msra.mxu1 %v3995_v59  ;;  %3711 = vmatpush3.bf16.msra.mxu0 %v3996_v60  ;;  %v4035_v59 = vld [vmem:[#allocation12 + $0x108] sm:$0xff]  }
 0x8f9   :  { %3690 = vmatprep.subr.bf16.mxu1 %v3997_v61  ;;  %3712 = vmatprep.subr.bf16.mxu0 %v3998_v1  ;;  %v4036_v60 = vld [vmem:[#allocation12 + $0x188] sm:$0xff]  }
 0x8fc   :  { %3691 = vmatpush3.bf16.msra.mxu1 %v3999_v62  ;;  %3713 = vmatpush3.bf16.msra.mxu0 %v4000_v63  ;;  %v4037_v62 = vld [vmem:[#allocation12 + $0x140] sm:$0xff]  }
 0x8fd   :  { %3692 = vmatprep.subr.bf16.mxu1 %v4001_v2  ;;  %3714 = vmatprep.subr.bf16.mxu0 %v4002_v3  ;;  %v4038_v63 = vld [vmem:[#allocation12 + $0x1c0] sm:$0xff]  }
 0x900   :  { %3693 = vmatpush3.bf16.msra.mxu1 %v4003_v4  ;;  %3715 = vmatpush3.bf16.msra.mxu0 %v4004_v5  ;;  %v4039_v4 = vld [vmem:[#allocation12 + $0x100] sm:$0xff]  }
 0x901   :  { %3694 = vmatprep.subr.bf16.mxu1 %v4005_v6  ;;  %3716 = vmatprep.subr.bf16.mxu0 %v4006_v7  ;;  %v4040_v5 = vld [vmem:[#allocation12 + $0x180] sm:$0xff]  }
 0x904   :  { %3695 = vmatpush3.bf16.msra.mxu1 %v4007_v8  ;;  %3717 = vmatpush3.bf16.msra.mxu0 %v4008_v9 }
 0x905   :  { %3724 = vmatprep.subr.bf16.mxu1 %v4009_v10  ;;  %3746 = vmatprep.subr.bf16.mxu0 %v4010_v11  ;;  %v4041_v10 = vld [vmem:[#allocation12 + $0x278] sm:$0xff]  }
 0x906   :  { %v4042_v11 = vld [vmem:[#allocation12 + $0x2f8] sm:$0xff]  }
 0x947   :  { %v1586_v12 = vpop.f32.mrf.mxu1  ;;  %v1629_v0 = vpop.f32.mrf.mxu0 }
 0x948   :  { %v1896_v27 = vmax.f32 %v1586_v12, 0.0  ;;  %v1898_v28 = vmax.f32 %v1629_v0, 0.0 }
 0x949   :  { %v1588_v23 = vpop.f32.mrf.mxu1  ;;  %v1631_v13 = vpop.f32.mrf.mxu0 }
 0x94a   :  { %v1897_v21 = vmax.f32 %v1588_v23, 0.0  ;;  %v1899_v22 = vmax.f32 %v1631_v13, 0.0 }
 0x94b   :  { %v1590_v15 = vpop.f32.mrf.mxu1  ;;  %v1633_v24 = vpop.f32.mrf.mxu0 }
 0x94c   :  { %v1912_v16 = vmax.f32 %v1590_v15, 0.0  ;;  %v1914_v18 = vmax.f32 %v1633_v24, 0.0 }
 0x94d   :  { %v1592_v19 = vpop.f32.mrf.mxu1  ;;  %v1635_v20 = vpop.f32.mrf.mxu0 }
 0x94e   :  { %v1913_v25 = vmax.f32 %v1592_v19, 0.0  ;;  %v1915_v26 = vmax.f32 %v1635_v20, 0.0  ;;  %v1928_v33 = vpack.c.bf16 %v1912_v16, %v1896_v27  ;;  %v1930_v34 = vpack.c.bf16 %v1914_v18, %v1898_v28  ;;  %v4043_v19 = vld [vmem:[#allocation12 + $0x238] sm:$0xff]   ;;  %v4047_v27 = vld [vmem:[#allocation12 + $0x230] sm:$0xff]  }
 0x94f   :  { %v4044_v20 = vld [vmem:[#allocation12 + $0x2b8] sm:$0xff]   ;;  %v4048_v28 = vld [vmem:[#allocation12 + $0x2b0] sm:$0xff]  }
 0x950   :  { %v1929_v29 = vpack.c.bf16 %v1913_v25, %v1897_v21  ;;  %v1931_v30 = vpack.c.bf16 %v1915_v26, %v1899_v22  ;;  %v4045_v25 = vld [vmem:[#allocation12 + $0x270] sm:$0xff]  }
 0x951   :  { %v4046_v26 = vld [vmem:[#allocation12 + $0x2f0] sm:$0xff]  }
 0x952   :  { %3000 = vmatprep.mubr.bf16.mxu1 %v1929_v29  ;;  %3041 = vmatprep.mubr.bf16.mxu0 %v1931_v30  ;;  %v4049_v29 = vld [vmem:[#allocation12 + $0x268] sm:$0xff]  }
 0x953   :  { %3001 = vmatmul.mubr.bf16.vlgmr.msra.gmra.mxu1 %v1928_v33  ;;  %3042 = vmatmul.mubr.bf16.vlgmr.msra.gmra.mxu0 %v1930_v34  ;;  %v4050_v30 = vld [vmem:[#allocation12 + $0x2e8] sm:$0xff]   ;;  %v4053_v33 = vld [vmem:[#allocation12 + $0x260] sm:$0xff]  }
 0x954   :  { %3725 = vmatpush3.bf16.msra.mxu1 %v4011_v31  ;;  %3747 = vmatpush3.bf16.msra.mxu0 %v4012_v32  ;;  %v4051_v31 = vld [vmem:[#allocation12 + $0x228] sm:$0xff]   ;;  %v4054_v34 = vld [vmem:[#allocation12 + $0x2e0] sm:$0xff]  }
 0x955   :  { %3726 = vmatprep.subr.bf16.mxu1 %v4013_v35  ;;  %3748 = vmatprep.subr.bf16.mxu0 %v4014_v36  ;;  %v4052_v32 = vld [vmem:[#allocation12 + $0x2a8] sm:$0xff]   ;;  %v4055_v35 = vld [vmem:[#allocation12 + $0x220] sm:$0xff]  }
 0x956   :  { %v4056_v36 = vld [vmem:[#allocation12 + $0x2a0] sm:$0xff]  }
 0x958   :  { %3727 = vmatpush3.bf16.msra.mxu1 %v4015_v37  ;;  %3749 = vmatpush3.bf16.msra.mxu0 %v4016_v38  ;;  %v4057_v37 = vld [vmem:[#allocation12 + $0x258] sm:$0xff]  }
 0x959   :  { %3728 = vmatprep.subr.bf16.mxu1 %v4017_v40  ;;  %3750 = vmatprep.subr.bf16.mxu0 %v4018_v41  ;;  %v4058_v38 = vld [vmem:[#allocation12 + $0x2d8] sm:$0xff]  }
 0x95a   :  { %v4059_v40 = vld [vmem:[#allocation12 + $0x218] sm:$0xff]  }
 0x95b   :  { %v4060_v41 = vld [vmem:[#allocation12 + $0x298] sm:$0xff]  }
 0x95c   :  { %3729 = vmatpush3.bf16.msra.mxu1 %v4019_v42  ;;  %3751 = vmatpush3.bf16.msra.mxu0 %v4020_v45  ;;  %v4061_v42 = vld [vmem:[#allocation12 + $0x250] sm:$0xff]  }
 0x95d   :  { %3730 = vmatprep.subr.bf16.mxu1 %v4021_v46  ;;  %3752 = vmatprep.subr.bf16.mxu0 %v4022_v17  ;;  %v4062_v45 = vld [vmem:[#allocation12 + $0x2d0] sm:$0xff]  }
 0x95e   :  { %v4063_v46 = vld [vmem:[#allocation12 + $0x210] sm:$0xff]  }
 0x95f   :  { %v4064_v17 = vld [vmem:[#allocation12 + $0x290] sm:$0xff]  }
 0x960   :  { %3731 = vmatpush3.bf16.msra.mxu1 %v4023_v47  ;;  %3753 = vmatpush3.bf16.msra.mxu0 %v4024_v39  ;;  %v4065_v47 = vld [vmem:[#allocation12 + $0x248] sm:$0xff]  }
 0x961   :  { %3732 = vmatprep.subr.bf16.mxu1 %v4025_v48  ;;  %3754 = vmatprep.subr.bf16.mxu0 %v4026_v49  ;;  %v4066_v39 = vld [vmem:[#allocation12 + $0x2c8] sm:$0xff]  }
 0x964   :  { %3733 = vmatpush3.bf16.msra.mxu1 %v4027_v50  ;;  %3755 = vmatpush3.bf16.msra.mxu0 %v4028_v51  ;;  %v4067_v50 = vld [vmem:[#allocation12 + $0x208] sm:$0xff]  }
 0x965   :  { %3734 = vmatprep.subr.bf16.mxu1 %v4029_v52  ;;  %3756 = vmatprep.subr.bf16.mxu0 %v4030_v53  ;;  %v4068_v51 = vld [vmem:[#allocation12 + $0x288] sm:$0xff]  }
 0x967   :  { %v1672_v57 = vpop.f32.mrf.mxu1  ;;  %v1715_v58 = vpop.f32.mrf.mxu0 }
 0x968   :  { %3735 = vmatpush3.bf16.msra.mxu1 %v4031_v54  ;;  %3757 = vmatpush3.bf16.msra.mxu0 %v4032_v55  ;;  %v1900_v15 = vmax.f32 %v1672_v57, 0.0  ;;  %v1902_v24 = vmax.f32 %v1715_v58, 0.0  ;;  %v4069_v54 = vld [vmem:[#allocation12 + $0x240] sm:$0xff]  }
 0x969   :  { %v1674_v61 = vpop.f32.mrf.mxu1  ;;  %v1717_v1 = vpop.f32.mrf.mxu0  ;;  %3736 = vmatprep.subr.bf16.mxu1 %v4033_v56  ;;  %3758 = vmatprep.subr.bf16.mxu0 %v4034_v44  ;;  %v4070_v55 = vld [vmem:[#allocation12 + $0x2c0] sm:$0xff]  }
 0x96a   :  { %v1901_v12 = vmax.f32 %v1674_v61, 0.0  ;;  %v1903_v0 = vmax.f32 %v1717_v1, 0.0  ;;  %v4071_v57 = vld [vmem:[#allocation12 + $0x200] sm:$0xff]  }
 0x96b   :  { %v1676_v2 = vpop.f32.mrf.mxu1  ;;  %v1719_v3 = vpop.f32.mrf.mxu0  ;;  %v4072_v58 = vld [vmem:[#allocation12 + $0x280] sm:$0xff]  }
 0x96c   :  { %3737 = vmatpush3.bf16.msra.mxu1 %v4035_v59  ;;  %3759 = vmatpush3.bf16.msra.mxu0 %v4036_v60  ;;  %v1916_v6 = vmax.f32 %v1676_v2, 0.0  ;;  %v1918_v7 = vmax.f32 %v1719_v3, 0.0 }
 0x96d   :  { %v1678_v8 = vpop.f32.mrf.mxu1  ;;  %v1721_v9 = vpop.f32.mrf.mxu0  ;;  %3738 = vmatprep.subr.bf16.mxu1 %v4037_v62  ;;  %3760 = vmatprep.subr.bf16.mxu0 %v4038_v63  ;;  %v4073_v62 = vld [vmem:[#allocation12 + $0x378] sm:$0xff]  }
 0x96e   :  { %v1917_v23 = vmax.f32 %v1678_v8, 0.0  ;;  %v1919_v13 = vmax.f32 %v1721_v9, 0.0  ;;  %v1932_v21 = vpack.c.bf16 %v1916_v6, %v1900_v15  ;;  %v1934_v22 = vpack.c.bf16 %v1918_v7, %v1902_v24  ;;  %v4074_v63 = vld [vmem:[#allocation12 + $0x3f8] sm:$0xff]   ;;  %v4079_v15 = vld [vmem:[#allocation12 + $0x330] sm:$0xff]  }
 0x96f   :  { %v4080_v24 = vld [vmem:[#allocation12 + $0x3b0] sm:$0xff]  }
 0x970   :  { %v1933_v16 = vpack.c.bf16 %v1917_v23, %v1901_v12  ;;  %v1935_v18 = vpack.c.bf16 %v1919_v13, %v1903_v0  ;;  %3739 = vmatpush3.bf16.msra.mxu1 %v4039_v4  ;;  %3761 = vmatpush3.bf16.msra.mxu0 %v4040_v5  ;;  %v4077_v23 = vld [vmem:[#allocation12 + $0x370] sm:$0xff]  }
 0x971   :  { %3768 = vmatprep.subr.bf16.mxu1 %v4041_v10  ;;  %3790 = vmatprep.subr.bf16.mxu0 %v4042_v11  ;;  %v4075_v10 = vld [vmem:[#allocation12 + $0x338] sm:$0xff]   ;;  %v4078_v13 = vld [vmem:[#allocation12 + $0x3f0] sm:$0xff]  }
 0x972   :  { %3082 = vmatprep.mubr.bf16.mxu1 %v1933_v16  ;;  %3123 = vmatprep.mubr.bf16.mxu0 %v1935_v18  ;;  %v4076_v11 = vld [vmem:[#allocation12 + $0x3b8] sm:$0xff]   ;;  %v4081_v16 = vld [vmem:[#allocation12 + $0x368] sm:$0xff]  }
 0x973   :  { %3083 = vmatmul.mubr.bf16.vlgmr.msra.gmra.mxu1 %v1932_v21  ;;  %3124 = vmatmul.mubr.bf16.vlgmr.msra.gmra.mxu0 %v1934_v22  ;;  %v4082_v18 = vld [vmem:[#allocation12 + $0x3e8] sm:$0xff]   ;;  %v4085_v21 = vld [vmem:[#allocation12 + $0x360] sm:$0xff]  }
 0x974   :  { %3769 = vmatpush3.bf16.msra.mxu1 %v4043_v19  ;;  %3791 = vmatpush3.bf16.msra.mxu0 %v4044_v20  ;;  %v4083_v19 = vld [vmem:[#allocation12 + $0x328] sm:$0xff]   ;;  %v4086_v22 = vld [vmem:[#allocation12 + $0x3e0] sm:$0xff]  }
 0x975   :  { %3770 = vmatprep.subr.bf16.mxu1 %v4045_v25  ;;  %3792 = vmatprep.subr.bf16.mxu0 %v4046_v26  ;;  %v4084_v20 = vld [vmem:[#allocation12 + $0x3a8] sm:$0xff]   ;;  %v4087_v25 = vld [vmem:[#allocation12 + $0x320] sm:$0xff]  }
 0x976   :  { %v4088_v26 = vld [vmem:[#allocation12 + $0x3a0] sm:$0xff]  }
 0x978   :  { %3771 = vmatpush3.bf16.msra.mxu1 %v4047_v27  ;;  %3793 = vmatpush3.bf16.msra.mxu0 %v4048_v28  ;;  %v4089_v27 = vld [vmem:[#allocation12 + $0x358] sm:$0xff]  }
 0x979   :  { %3772 = vmatprep.subr.bf16.mxu1 %v4049_v29  ;;  %3794 = vmatprep.subr.bf16.mxu0 %v4050_v30  ;;  %v4090_v28 = vld [vmem:[#allocation12 + $0x3d8] sm:$0xff]  }
 0x97a   :  { %v4091_v29 = vld [vmem:[#allocation12 + $0x318] sm:$0xff]  }
 0x97b   :  { %v4092_v30 = vld [vmem:[#allocation12 + $0x398] sm:$0xff]  }
 0x97c   :  { %3773 = vmatpush3.bf16.msra.mxu1 %v4051_v31  ;;  %3795 = vmatpush3.bf16.msra.mxu0 %v4052_v32  ;;  %v4093_v31 = vld [vmem:[#allocation12 + $0x350] sm:$0xff]  }
 0x97d   :  { %3774 = vmatprep.subr.bf16.mxu1 %v4053_v33  ;;  %3796 = vmatprep.subr.bf16.mxu0 %v4054_v34  ;;  %v4094_v32 = vld [vmem:[#allocation12 + $0x3d0] sm:$0xff]  }
 0x97e   :  { %v4095_v33 = vld [vmem:[#allocation12 + $0x310] sm:$0xff]  }
 0x97f   :  { %v4096_v34 = vld [vmem:[#allocation12 + $0x390] sm:$0xff]  }
 0x980   :  { %3775 = vmatpush3.bf16.msra.mxu1 %v4055_v35  ;;  %3797 = vmatpush3.bf16.msra.mxu0 %v4056_v36  ;;  %v4097_v35 = vld [vmem:[#allocation12 + $0x348] sm:$0xff]  }
 0x981   :  { %3776 = vmatprep.subr.bf16.mxu1 %v4057_v37  ;;  %3798 = vmatprep.subr.bf16.mxu0 %v4058_v38  ;;  %v4098_v36 = vld [vmem:[#allocation12 + $0x3c8] sm:$0xff]  }
 0x984   :  { %3777 = vmatpush3.bf16.msra.mxu1 %v4059_v40  ;;  %3799 = vmatpush3.bf16.msra.mxu0 %v4060_v41  ;;  %v4099_v40 = vld [vmem:[#allocation12 + $0x308] sm:$0xff]  }
 0x985   :  { %3778 = vmatprep.subr.bf16.mxu1 %v4061_v42  ;;  %3800 = vmatprep.subr.bf16.mxu0 %v4062_v45  ;;  %v4100_v41 = vld [vmem:[#allocation12 + $0x388] sm:$0xff]  }
 0x987   :  { %v1758_v48 = vpop.f32.mrf.mxu1  ;;  %v1801_v49 = vpop.f32.mrf.mxu0 }
 0x988   :  { %3779 = vmatpush3.bf16.msra.mxu1 %v4063_v46  ;;  %3801 = vmatpush3.bf16.msra.mxu0 %v4064_v17  ;;  %v1904_v6 = vmax.f32 %v1758_v48, 0.0  ;;  %v1906_v7 = vmax.f32 %v1801_v49, 0.0  ;;  %v4101_v46 = vld [vmem:[#allocation12 + $0x340] sm:$0xff]  }
 0x989   :  { %v1760_v52 = vpop.f32.mrf.mxu1  ;;  %v1803_v53 = vpop.f32.mrf.mxu0  ;;  %3780 = vmatprep.subr.bf16.mxu1 %v4065_v47  ;;  %3802 = vmatprep.subr.bf16.mxu0 %v4066_v39  ;;  %v4102_v17 = vld [vmem:[#allocation12 + $0x3c0] sm:$0xff]  }
 0x98a   :  { %v1905_v2 = vmax.f32 %v1760_v52, 0.0  ;;  %v1907_v3 = vmax.f32 %v1803_v53, 0.0  ;;  %v4103_v48 = vld [vmem:[#allocation12 + $0x300] sm:$0xff]  }
 0x98b   :  { %v1762_v56 = vpop.f32.mrf.mxu1  ;;  %v1805_v44 = vpop.f32.mrf.mxu0  ;;  %v4104_v49 = vld [vmem:[#allocation12 + $0x380] sm:$0xff]  }
 0x98c   :  { %3781 = vmatpush3.bf16.msra.mxu1 %v4067_v50  ;;  %3803 = vmatpush3.bf16.msra.mxu0 %v4068_v51  ;;  %v1920_v59 = vmax.f32 %v1762_v56, 0.0  ;;  %v1922_v60 = vmax.f32 %v1805_v44, 0.0 }
 0x98d   :  { %v1764_v61 = vpop.f32.mrf.mxu1  ;;  %v1807_v1 = vpop.f32.mrf.mxu0  ;;  %3782 = vmatprep.subr.bf16.mxu1 %v4069_v54  ;;  %3804 = vmatprep.subr.bf16.mxu0 %v4070_v55 }
 0x98e   :  { %v1921_v4 = vmax.f32 %v1764_v61, 0.0  ;;  %v1923_v5 = vmax.f32 %v1807_v1, 0.0  ;;  %v1936_v12 = vpack.c.bf16 %v1920_v59, %v1904_v6  ;;  %v1938_v0 = vpack.c.bf16 %v1922_v60, %v1906_v7 }
 0x990   :  { %v1937_v8 = vpack.c.bf16 %v1921_v4, %v1905_v2  ;;  %v1939_v9 = vpack.c.bf16 %v1923_v5, %v1907_v3  ;;  %3783 = vmatpush3.bf16.msra.mxu1 %v4071_v57  ;;  %3805 = vmatpush3.bf16.msra.mxu0 %v4072_v58 }
 0x991   :  { %3812 = vmatprep.subr.bf16.mxu1 %v4073_v62  ;;  %3834 = vmatprep.subr.bf16.mxu0 %v4074_v63 }
 0x992   :  { %3164 = vmatprep.mubr.bf16.mxu1 %v1937_v8  ;;  %3205 = vmatprep.mubr.bf16.mxu0 %v1939_v9 }
 0x993   :  { %3165 = vmatmul.mubr.bf16.vlgmr.msra.gmra.mxu1 %v1936_v12  ;;  %3206 = vmatmul.mubr.bf16.vlgmr.msra.gmra.mxu0 %v1938_v0 }
 0x994   :  { %3813 = vmatpush3.bf16.msra.mxu1 %v4075_v10  ;;  %3835 = vmatpush3.bf16.msra.mxu0 %v4076_v11 }
 0x995   :  { %3814 = vmatprep.subr.bf16.mxu1 %v4077_v23  ;;  %3836 = vmatprep.subr.bf16.mxu0 %v4078_v13 }
 0x998   :  { %3815 = vmatpush3.bf16.msra.mxu1 %v4079_v15  ;;  %3837 = vmatpush3.bf16.msra.mxu0 %v4080_v24 }
 0x999   :  { %3816 = vmatprep.subr.bf16.mxu1 %v4081_v16  ;;  %3838 = vmatprep.subr.bf16.mxu0 %v4082_v18 }
 0x99c   :  { %3817 = vmatpush3.bf16.msra.mxu1 %v4083_v19  ;;  %3839 = vmatpush3.bf16.msra.mxu0 %v4084_v20 }
 0x99d   :  { %3818 = vmatprep.subr.bf16.mxu1 %v4085_v21  ;;  %3840 = vmatprep.subr.bf16.mxu0 %v4086_v22 }
 0x9a0   :  { %3819 = vmatpush3.bf16.msra.mxu1 %v4087_v25  ;;  %3841 = vmatpush3.bf16.msra.mxu0 %v4088_v26 }
 0x9a1   :  { %3820 = vmatprep.subr.bf16.mxu1 %v4089_v27  ;;  %3842 = vmatprep.subr.bf16.mxu0 %v4090_v28 }
 0x9a4   :  { %3821 = vmatpush3.bf16.msra.mxu1 %v4091_v29  ;;  %3843 = vmatpush3.bf16.msra.mxu0 %v4092_v30 }
 0x9a5   :  { %3822 = vmatprep.subr.bf16.mxu1 %v4093_v31  ;;  %3844 = vmatprep.subr.bf16.mxu0 %v4094_v32 }
 0x9a7   :  { %v1844_v37 = vpop.f32.mrf.mxu1  ;;  %v1887_v38 = vpop.f32.mrf.mxu0 }
 0x9a8   :  { %3823 = vmatpush3.bf16.msra.mxu1 %v4095_v33  ;;  %3845 = vmatpush3.bf16.msra.mxu0 %v4096_v34  ;;  %v1908_v57 = vmax.f32 %v1844_v37, 0.0  ;;  %v1910_v58 = vmax.f32 %v1887_v38, 0.0 }
 0x9a9   :  { %v1846_v42 = vpop.f32.mrf.mxu1  ;;  %v1889_v45 = vpop.f32.mrf.mxu0  ;;  %3824 = vmatprep.subr.bf16.mxu1 %v4097_v35  ;;  %3846 = vmatprep.subr.bf16.mxu0 %v4098_v36 }
 0x9aa   :  { %v1909_v54 = vmax.f32 %v1846_v42, 0.0  ;;  %v1911_v55 = vmax.f32 %v1889_v45, 0.0 }
 0x9ab   :  { %v1848_v47 = vpop.f32.mrf.mxu1  ;;  %v1891_v39 = vpop.f32.mrf.mxu0 }
 0x9ac   :  { %3825 = vmatpush3.bf16.msra.mxu1 %v4099_v40  ;;  %3847 = vmatpush3.bf16.msra.mxu0 %v4100_v41  ;;  %v1924_v50 = vmax.f32 %v1848_v47, 0.0  ;;  %v1926_v51 = vmax.f32 %v1891_v39, 0.0 }
 0x9ad   :  { %v1850_v52 = vpop.f32.mrf.mxu1  ;;  %v1893_v53 = vpop.f32.mrf.mxu0  ;;  %3826 = vmatprep.subr.bf16.mxu1 %v4101_v46  ;;  %3848 = vmatprep.subr.bf16.mxu0 %v4102_v17 }
 0x9ae   :  { %v1925_v56 = vmax.f32 %v1850_v52, 0.0  ;;  %v1927_v44 = vmax.f32 %v1893_v53, 0.0  ;;  %v1940_v61 = vpack.c.bf16 %v1924_v50, %v1908_v57  ;;  %v1942_v1 = vpack.c.bf16 %v1926_v51, %v1910_v58 }
 0x9b0   :  { %v1941_v59 = vpack.c.bf16 %v1925_v56, %v1909_v54  ;;  %v1943_v60 = vpack.c.bf16 %v1927_v44, %v1911_v55  ;;  %3827 = vmatpush3.bf16.msra.mxu1 %v4103_v48  ;;  %3849 = vmatpush3.bf16.msra.mxu0 %v4104_v49 }
 0x9b2   :  { %3246 = vmatprep.mubr.bf16.mxu1 %v1941_v59  ;;  %3287 = vmatprep.mubr.bf16.mxu0 %v1943_v60 }
 0x9b3   :  { %3247 = vmatmul.mubr.bf16.vlgmr.msra.gmra.mxu1 %v1940_v61  ;;  %3288 = vmatmul.mubr.bf16.vlgmr.msra.gmra.mxu0 %v1942_v1 }
 0xa13   :  { %v3696_v62 = vpop.f32.mrf.mxu1  ;;  %v3718_v63 = vpop.f32.mrf.mxu0 }
 0xa15   :  { %v3697_v2 = vpop.f32.mrf.mxu1  ;;  %v3719_v3 = vpop.f32.mrf.mxu0 }
 0xa16   :  { %v3698_v13 = vadd.f32 %v3697_v2, %v3696_v62  ;;  %v3720_v21 = vadd.f32 %v3719_v3, %v3718_v63 }
 0xa17   :  { %v3699_v4 = vpop.f32.mrf.mxu1  ;;  %v3721_v5 = vpop.f32.mrf.mxu0 }
 0xa18   :  { %v3003_v18 = vadd.f32 %v3698_v13, %v4470_v43  ;;  %v3652_v13 = vld [vmem:[%s4514_s8] ss:$0 sm:$0xff] }
 0xa19   :  { %v3700_v6 = vpop.f32.mrf.mxu1  ;;  %v3722_v7 = vpop.f32.mrf.mxu0 }
 0xa1a   :  { %v3701_v19 = vadd.f32 %v3700_v6, %v3699_v4  ;;  %v3044_v26 = vadd.f32 %v3720_v21, %v3003_v18  ;;  %v3723_v29 = vadd.f32 %v3722_v7, %v3721_v5 }
 0xa1c   :  { %v3006_v27 = vadd.f32 %v3701_v19, %v4472_v14 }
 0xa1e   :  { %v3047_v33 = vadd.f32 %v3723_v29, %v3006_v27 }
 0xa33   :  { %v3740_v8 = vpop.f32.mrf.mxu1  ;;  %v3762_v9 = vpop.f32.mrf.mxu0 }
 0xa35   :  { %v3741_v10 = vpop.f32.mrf.mxu1  ;;  %v3763_v11 = vpop.f32.mrf.mxu0 }
 0xa36   :  { %v3742_v22 = vadd.f32 %v3741_v10, %v3740_v8  ;;  %v3764_v34 = vadd.f32 %v3763_v11, %v3762_v9 }
 0xa37   :  { %v3743_v12 = vpop.f32.mrf.mxu1  ;;  %v3765_v0 = vpop.f32.mrf.mxu0 }
 0xa38   :  { %v3085_v30 = vadd.f32 %v3742_v22, %v3044_v26 }
 0xa39   :  { %v3744_v23 = vpop.f32.mrf.mxu1  ;;  %v3766_v15 = vpop.f32.mrf.mxu0 }
 0xa3a   :  { %v3745_v31 = vadd.f32 %v3744_v23, %v3743_v12  ;;  %v3126_v37 = vadd.f32 %v3764_v34, %v3085_v30  ;;  %v3767_v40 = vadd.f32 %v3766_v15, %v3765_v0 }
 0xa3c   :  { %v3088_v38 = vadd.f32 %v3745_v31, %v3047_v33 }
 0xa3e   :  { %v3129_v17 = vadd.f32 %v3767_v40, %v3088_v38 }
 0xa53   :  { %v3784_v24 = vpop.f32.mrf.mxu1  ;;  %v3806_v16 = vpop.f32.mrf.mxu0 }
 0xa55   :  { %v3785_v20 = vpop.f32.mrf.mxu1  ;;  %v3807_v25 = vpop.f32.mrf.mxu0 }
 0xa56   :  { %v3786_v35 = vadd.f32 %v3785_v20, %v3784_v24  ;;  %v3808_v47 = vadd.f32 %v3807_v25, %v3806_v16  ;;  %v3653_v24 = vld [vmem:[%s4515_s9] ss:$0 sm:$0xff] }
 0xa57   :  { %v3787_v28 = vpop.f32.mrf.mxu1  ;;  %v3809_v32 = vpop.f32.mrf.mxu0 }
 0xa58   :  { %v3167_v41 = vadd.f32 %v3786_v35, %v3126_v37 }
 0xa59   :  { %v3788_v36 = vpop.f32.mrf.mxu1  ;;  %v3810_v43 = vpop.f32.mrf.mxu0 }
 0xa5a   :  { %v3789_v42 = vadd.f32 %v3788_v36, %v3787_v28  ;;  %v3208_v48 = vadd.f32 %v3808_v47, %v3167_v41  ;;  %v3811_v53 = vadd.f32 %v3810_v43, %v3809_v32 }
 0xa5c   :  { %v3170_v49 = vadd.f32 %v3789_v42, %v3129_v17 }
 0xa5e   :  { %v3211_v57 = vadd.f32 %v3811_v53, %v3170_v49 }
 0xa73   :  { %v3828_v45 = vpop.f32.mrf.mxu1  ;;  %v3850_v46 = vpop.f32.mrf.mxu0 }
 0xa75   :  { %v3829_v14 = vpop.f32.mrf.mxu1  ;;  %v3851_v39 = vpop.f32.mrf.mxu0 }
 0xa76   :  { %v3830_v50 = vadd.f32 %v3829_v14, %v3828_v45  ;;  %v3852_v55 = vadd.f32 %v3851_v39, %v3850_v46 }
 0xa77   :  { %v3831_v51 = vpop.f32.mrf.mxu1  ;;  %v3853_v52 = vpop.f32.mrf.mxu0 }
 0xa78   :  { %v3249_v54 = vadd.f32 %v3830_v50, %v3208_v48 }
 0xa79   :  { %v3832_v56 = vpop.f32.mrf.mxu1  ;;  %v3854_v44 = vpop.f32.mrf.mxu0 }
 0xa7a   :  { %v3833_v58 = vadd.f32 %v3832_v56, %v3831_v51  ;;  %v3290_v59 = vadd.f32 %v3852_v55, %v3249_v54  ;;  %v3855_v61 = vadd.f32 %v3854_v44, %v3853_v52 }
 0xa7c   :  { %v3252_v60 = vadd.f32 %v3833_v58, %v3211_v57  ;;  %3298 = vadd.xlane.f32.xlu1 %v3290_v59 }
 0xa7e   :  { %v3293_v1 = vadd.f32 %v3855_v61, %v3252_v60 }
 0xa80   :  { %3300 = vadd.xlane.f32.xlu0 %v3293_v1 }
 0xb05   :  { %v3299_v62 = vpop.xlane.xlu1 %3298 }
 0xb06   :  { %v3302_v63 = vmul.f32 0.0078125, %v3299_v62 }
 0xb08   :  { %v3304_v2 = vsub.f32 %v3290_v59, %v3302_v63 }
 0xb09   :  { %v3301_v3 = vpop.xlane.xlu0 %3300 }
 0xb0a   :  { %v3303_v4 = vmul.f32 0.0078125, %v3301_v3  ;;  %v3306_v5 = vmul.f32 %v3304_v2, %v3304_v2 }
 0xb0c   :  { %v3305_v6 = vsub.f32 %v3293_v1, %v3303_v4  ;;  %3308 = vadd.xlane.f32.xlu1 %v3306_v5 }
 0xb0e   :  { %v3307_v7 = vmul.f32 %v3305_v6, %v3305_v6 }
 0xb10   :  { %3310 = vadd.xlane.f32.xlu0 %v3307_v7 }
 0xb95   :  { %v3309_v8 = vpop.xlane.xlu1 %3308 }
 0xb96   :  { %v3312_v9 = vmul.f32 0.0078125, %v3309_v8 }
 0xb98   :  { %v3314_v10 = vadd.f32 1e-05, %v3312_v9 }
 0xb99   :  { %v3311_v11 = vpop.xlane.xlu0 %3310 }
 0xb9a   :  { %4125 = vrsqrt.f32 %v3314_v10  ;;  %v3313_v12 = vmul.f32 0.0078125, %v3311_v11 }
 0xb9c   :  { %v3315_v0 = vadd.f32 1e-05, %v3313_v12 }
 0xb9e   :  { %4127 = vrsqrt.f32 %v3315_v0 }
 0xba7   :  { %v4126_v23 = vpop.eup %4125 }
 0xba8   :  { %v3318_v15 = vmul.f32 %v4126_v23, %v3304_v2 }
 0xbaa   :  { %v3326_v16 = vmul.f32 %v3652_v13, %v3318_v15 }
 0xbab   :  { %v4128_v18 = vpop.eup %4127 }
 0xbac   :  { %v3319_v19 = vmul.f32 %v4128_v18, %v3305_v6  ;;  %v3334_v20 = vadd.f32 %v3653_v24, %v3326_v16 }
 0xbae   :  { %v3327_v21 = vmul.f32 %v3652_v13, %v3319_v19  ;;  %3336 = vst [vmem:[#allocation14] sm:$0xff] %v3334_v20 }
 0xbb0   :  { %v3335_v22 = vadd.f32 %v3653_v24, %v3327_v21 }
 0xbb2   :  { %3337 = vst [vmem:[#allocation14 + $0x8] sm:$0xff] %v3335_v22 }
 0xbb3   :  { %4260 = shalt.err (!%p4257_p6)
}
 0xbb4   :  { %3349 = dma.vmem_to_hbm [thread:$0]  %s3344_s12, 256, %s4516_s10, [#allocation5], %s4281_s18, %s4281_s18, %s4282_s19  }
 0xbb5   :  { %4277 = dma.done.wait [#allocation5], 256  }
 0xbb6   :  { %4278 = vsyncadd [#allocation5], 4294967040 }
 0xbb7   :  { %3353 = vsyncpa [#allocation4], 1 }
 0xbb8   :  { %3354 = vsyncpa [#allocation7], 1 }
 0xbb9   :  { %3355 = vsyncpa [#allocation10], 1 }
 0xbba   :  { %3356 = vsyncpa [#allocation13], 1 }
 0xbbb   :  { %3357 = vsyncpa [#allocation5], 1 }

</bundles_post_ra>
